<compile_context>
chip_gen: v6e
topology: v6e:2x2x1
jax: 0.10.0
libtpu: 0.0.40
codegen_flags: <defaults>
</compile_context>

<pallas_src>
import jax
import jax.numpy as jnp
from jax import lax
from jax.experimental import pallas as pl
from jax.experimental.pallas import tpu as pltpu

# ---- config (mirrors the SeqLabel config fields the forward pass uses) ----
VOCAB_SIZE = 50
VOCAB_PAD = 64           # embedding table padded to 64 rows (zeros) for aligned K
EMBEDDING_DIM = 32
HIDDEN_DIM = 32          # hidden_dim_lstm
NUM_LAYERS = 1           # fused kernel below assumes a single BiGRU layer
LAYER_SIZE = 32
NUM_TOKEN_TYPE = 5
BATCH = 2
SEQ = 8
LANE = 128               # each GRU gate padded to a full 128-lane block


# ------------------------- fused Pallas kernel -----------------------------
def bigru_ner_kernel(ids_ref, emb_ref, wih_ref, bih_ref, whh_ref, bhh_ref,
                     h0_ref, utop_ref, ubot_ref, bs_ref, vt_ref, bc_ref,
                     o_ref, gi_ref, yf_ref, yb_ref):
    """Embedding gather + bidirectional GRU + NER head, one invocation.

    ids_ref : (T*2B, 1) int32  token ids; rows [t*2B : t*2B+B) = fwd input x[t],
                               rows [t*2B+B : (t+1)*2B) = bwd input x[T-1-t]
    emb_ref : (V_pad, E)       embedding table (rows >= vocab_size are zero)
    wih_ref : (E, 6*128)       input-proj weights, fwd gates r|z|n in lane blocks 0..2,
                               bwd gates in blocks 3..5 (each gate padded to 128 lanes)
    whh_ref : (H, 6*128)       recurrent weights, same lane-block packing
    bih/bhh : (1, 6*128)       biases, same packing
    h0_ref  : (2B, 128)        initial hidden state, fwd rows 0:B, bwd rows B:2B,
                               lanes H:128 zero
    utop/ubot: (128, L)        U_ner^T split along K (fwd rows / bwd rows), zero-padded
    bs/vt/bc: (1,L), (L,C), (1,C)
    o_ref   : (T*B, C)         emissions, flattened time-major (row = t*B + b)
    gi_ref  : (T*2B, 6*128)    VMEM scratch - hoisted input projections
    yf/yb   : (T*B, 128)       VMEM scratch - per-time fwd / bwd hidden states
    """
    B2 = h0_ref.shape[0]                   # 2*B
    B = B2 // 2
    T = ids_ref.shape[0] // B2
    H = whh_ref.shape[0]
    V = emb_ref.shape[0]

    # ---------------- prologue (off the serial critical path) ----------------
    # Embedding gather as a one-hot matmul against the VMEM-resident table.
    ids = ids_ref[...]                                                   # (T*2B, 1)
    onehot = (lax.broadcasted_iota(jnp.int32, (T * B2, V), 1) == ids).astype(jnp.float32)
    x_stack = jnp.dot(onehot, emb_ref[...],
                      preferred_element_type=jnp.float32)                # (T*2B, E)
    # Hoisted input projection for BOTH directions (r|z|n, 128-lane blocks each).
    gi_ref[...] = (jnp.dot(x_stack, wih_ref[...],
                           preferred_element_type=jnp.float32) + bih_ref[...])

    row_is_fwd = lax.broadcasted_iota(jnp.int32, (B2, LANE), 0) < B      # (2B, 128)

    # ---------------- serial recurrence: T static steps, directions fused ----
    h = h0_ref[...]                                                      # (2B, 128)
    for t in range(T):
        gi = gi_ref[t * B2:(t + 1) * B2, :]                              # (2B, 6*128)
        # ONE recurrent MXU push per step (both directions, all gates).
        gh = (jnp.dot(h[:, :H], whh_ref[...],
                      preferred_element_type=jnp.float32) + bhh_ref[...])
        # All slices below are 128-lane-block aligned (free vreg selection).
        r_f = jax.nn.sigmoid(gi[:, 0 * LANE:1 * LANE] + gh[:, 0 * LANE:1 * LANE])
        z_f = jax.nn.sigmoid(gi[:, 1 * LANE:2 * LANE] + gh[:, 1 * LANE:2 * LANE])
        n_f = jnp.tanh(gi[:, 2 * LANE:3 * LANE] + r_f * gh[:, 2 * LANE:3 * LANE])
        r_b = jax.nn.sigmoid(gi[:, 3 * LANE:4 * LANE] + gh[:, 3 * LANE:4 * LANE])
        z_b = jax.nn.sigmoid(gi[:, 4 * LANE:5 * LANE] + gh[:, 4 * LANE:5 * LANE])
        n_b = jnp.tanh(gi[:, 5 * LANE:6 * LANE] + r_b * gh[:, 5 * LANE:6 * LANE])
        h_f = (1.0 - z_f) * n_f + z_f * h          # valid in rows 0:B
        h_b = (1.0 - z_b) * n_b + z_b * h          # valid in rows B:2B
        h = jnp.where(row_is_fwd, h_f, h_b)        # merge row groups (one vsel)
        yf_ref[t * B:(t + 1) * B, :] = h[0:B, :]
        yb_ref[(T - 1 - t) * B:(T - t) * B, :] = h[B:B2, :]

    # ---------------- NER head epilogue (flattened over T*B, K-split) --------
    h1 = jnp.tanh(
        jnp.dot(yf_ref[...], utop_ref[...], preferred_element_type=jnp.float32)
        + jnp.dot(yb_ref[...], ubot_ref[...], preferred_element_type=jnp.float32)
        + bs_ref[...])                                                   # (T*B, L)
    o_ref[...] = jnp.dot(h1, vt_ref[...],
                         preferred_element_type=jnp.float32) + bc_ref[...]


def bigru_ner_emissions(ids_stack, p):
    """ids_stack: (T*2B, 1) int32 -> emissions (T, B, C) time-major."""
    T, B, C = SEQ, BATCH, NUM_TOKEN_TYPE
    vspec = pl.BlockSpec(memory_space=pltpu.MemorySpace.VMEM)
    out_flat = pl.pallas_call(
        bigru_ner_kernel,
        out_shape=jax.ShapeDtypeStruct((T * B, C), jnp.float32),
        in_specs=[vspec] * 12,
        out_specs=vspec,
        scratch_shapes=[pltpu.VMEM((T * 2 * B, 6 * LANE), jnp.float32),   # gi (hoisted)
                        pltpu.VMEM((T * B, LANE), jnp.float32),           # fwd hidden
                        pltpu.VMEM((T * B, LANE), jnp.float32)],          # bwd hidden
        cost_estimate=pl.CostEstimate(flops=6_000_000, transcendentals=26_000,
                                      bytes_accessed=600_000),
    )(ids_stack, p['embedding'], p['w_ih'], p['b_ih'], p['w_hh'], p['b_hh'],
      p['h0'], p['u_top'], p['u_bot'], p['b_s'], p['v_t'], p['b_c'])
    return out_flat.reshape(T, B, C)


# ----------------- CRF (tiny tag dim, plain JAX glue) ----------------------
# TODO(synk): CRF recursion + Viterbi backtracking kept in plain JAX (lax.scan);
# tag dim is tiny (C=5) and decode needs data-dependent backtracking/gathers.
def crf_log_likelihood(em_tb, tags_tb, mask_tb, start_t, end_t, trans):
    T, B, C = em_tb.shape
    batch_idx = jnp.arange(B)

    # numerator: gold-path score (assumes mask[0] == 1, as torchcrf requires)
    score0 = start_t[tags_tb[0]] + em_tb[0, batch_idx, tags_tb[0]]

    def num_body(carry, inp):
        score, prev_tag = carry
        em_t, tg_t, mk_t = inp
        step = trans[prev_tag, tg_t] + em_t[batch_idx, tg_t]
        score = score + step * mk_t
        prev_tag = jnp.where(mk_t > 0, tg_t, prev_tag)
        return (score, prev_tag), None

    (num, last_tag), _ = lax.scan(num_body, (score0, tags_tb[0]),
                                  (em_tb[1:], tags_tb[1:], mask_tb[1:]))
    num = num + end_t[last_tag]

    # denominator: log partition (forward algorithm)
    alpha0 = start_t[None, :] + em_tb[0]

    def den_body(alpha, inp):
        em_t, mk_t = inp
        nxt = jax.nn.logsumexp(
            alpha[:, :, None] + trans[None, :, :] + em_t[:, None, :], axis=1)
        return jnp.where(mk_t[:, None] > 0, nxt, alpha), None

    alpha, _ = lax.scan(den_body, alpha0, (em_tb[1:], mask_tb[1:]))
    den = jax.nn.logsumexp(alpha + end_t[None, :], axis=1)
    return num - den


def crf_decode(em_tb, start_t, end_t, trans):
    # Matches the module: crf_model.decode(ner_score) is called WITHOUT a mask.
    T, B, C = em_tb.shape
    score0 = start_t[None, :] + em_tb[0]

    def vit_body(score, em_t):
        cand = score[:, :, None] + trans[None, :, :] + em_t[:, None, :]
        return jnp.max(cand, axis=1), jnp.argmax(cand, axis=1)

    score, history = lax.scan(vit_body, score0, em_tb[1:])       # (T-1, B, C)
    last_tag = jnp.argmax(score + end_t[None, :], axis=1)        # (B,)

    def back_body(tag, hist_t):
        prev = jnp.take_along_axis(hist_t, tag[:, None], axis=1)[:, 0]
        return prev, prev

    _, earlier = lax.scan(back_body, last_tag, history, reverse=True)  # (T-1, B)
    tags_tb = jnp.concatenate([earlier, last_tag[None, :]], axis=0)    # (T, B)
    return tags_tb.T                                                   # (B, T)


# ----------------------------- forward -------------------------------------
def seqlabel_forward(params, text_ids, token_types, mask):
    assert NUM_LAYERS == 1  # fused kernel covers the single BiGRU layer
    # TODO(synk): dropout_* layers skipped (use_dropout=False, deterministic eval).
    B, T = text_ids.shape
    ids_tm = text_ids.T.astype(jnp.int32)                           # (T, B) time-major
    ids_stack = jnp.concatenate([ids_tm, ids_tm[::-1]], axis=1)     # (T, 2B): fwd | bwd
    ids_stack = ids_stack.reshape(T * 2 * B, 1)

    em_tb = bigru_ner_emissions(ids_stack, params)                  # (T, B, C)

    tags = jnp.clip(token_types, 0, NUM_TOKEN_TYPE - 1).astype(jnp.int32)
    llk = crf_log_likelihood(em_tb, tags.T, mask.astype(jnp.float32).T,
                             params['crf_start'], params['crf_end'],
                             params['crf_trans'])
    loss_ner = -jnp.sum(llk)                                        # torchcrf reduction='sum'
    pred_ner = crf_decode(em_tb, params['crf_start'], params['crf_end'],
                          params['crf_trans'])
    return loss_ner, pred_ner


# ------------------------- deterministic init ------------------------------
def _pad_gate_lanes(w3h, h):
    # (K, 3h) gate-packed r|z|n -> (K, 3*LANE), gate g at lanes [g*LANE, g*LANE+h)
    k = w3h.shape[0]
    out = jnp.zeros((k, 3 * LANE), jnp.float32)
    for g in range(3):
        out = out.at[:, g * LANE:g * LANE + h].set(w3h[:, g * h:(g + 1) * h])
    return out


def _pad_rows(w, rows):
    out = jnp.zeros((rows, w.shape[1]), jnp.float32)
    return out.at[:w.shape[0], :].set(w)


def init_params(key):
    keys = iter(jax.random.split(key, 24))
    p = {}
    emb = jax.random.normal(next(keys), (VOCAB_SIZE, EMBEDDING_DIM), jnp.float32)
    p['embedding'] = _pad_rows(emb, VOCAB_PAD)                       # (V_pad, E)

    bound = 1.0 / (HIDDEN_DIM ** 0.5)

    def u(k, shape, lo=-bound, hi=bound):
        return jax.random.uniform(k, shape, jnp.float32, lo, hi)

    # fwd / bwd GRU weights, gate order r|z|n (stored transposed: (in, 3H)).
    wih_f = u(next(keys), (EMBEDDING_DIM, 3 * HIDDEN_DIM))
    whh_f = u(next(keys), (HIDDEN_DIM, 3 * HIDDEN_DIM))
    bih_f = u(next(keys), (1, 3 * HIDDEN_DIM))
    bhh_f = u(next(keys), (1, 3 * HIDDEN_DIM))
    wih_b = u(next(keys), (EMBEDDING_DIM, 3 * HIDDEN_DIM))
    whh_b = u(next(keys), (HIDDEN_DIM, 3 * HIDDEN_DIM))
    bih_b = u(next(keys), (1, 3 * HIDDEN_DIM))
    bhh_b = u(next(keys), (1, 3 * HIDDEN_DIM))
    pack = lambda f, b: jnp.concatenate(
        [_pad_gate_lanes(f, HIDDEN_DIM), _pad_gate_lanes(b, HIDDEN_DIM)], axis=1)
    p['w_ih'] = pack(wih_f, wih_b)       # (E, 6*128)
    p['w_hh'] = pack(whh_f, whh_b)       # (H, 6*128)
    p['b_ih'] = pack(bih_f, bih_b)       # (1, 6*128)
    p['b_hh'] = pack(bhh_f, bhh_b)       # (1, 6*128)

    # initial hidden state (module uses torch.randn(2*num_layers, B, H))
    h0 = jax.random.normal(next(keys), (2 * NUM_LAYERS, BATCH, HIDDEN_DIM), jnp.float32)
    h0 = h0.reshape(2 * NUM_LAYERS * BATCH, HIDDEN_DIM)
    p['h0'] = jnp.pad(h0, ((0, 0), (0, LANE - HIDDEN_DIM)))          # (2B, 128)

    # NER head: U_ner (L, 2H), V_ner (C, L) — torch.rand (uniform[0,1)) init.
    u_ner = jax.random.uniform(next(keys), (LAYER_SIZE, 2 * HIDDEN_DIM), jnp.float32)
    u_t = u_ner.T                                                    # (2H, L)
    p['u_top'] = _pad_rows(u_t[:HIDDEN_DIM], LANE)                   # fwd half  (128, L)
    p['u_bot'] = _pad_rows(u_t[HIDDEN_DIM:], LANE)                   # bwd half  (128, L)
    p['v_t'] = jax.random.uniform(next(keys), (NUM_TOKEN_TYPE, LAYER_SIZE),
                                  jnp.float32).T                     # (L, C)
    p['b_s'] = jax.random.uniform(next(keys), (1, LAYER_SIZE), jnp.float32)
    p['b_c'] = jax.random.uniform(next(keys), (1, NUM_TOKEN_TYPE), jnp.float32)

    p['crf_start'] = jax.random.uniform(next(keys), (NUM_TOKEN_TYPE,),
                                        jnp.float32, -0.1, 0.1)
    p['crf_end'] = jax.random.uniform(next(keys), (NUM_TOKEN_TYPE,),
                                      jnp.float32, -0.1, 0.1)
    p['crf_trans'] = jax.random.uniform(next(keys),
                                        (NUM_TOKEN_TYPE, NUM_TOKEN_TYPE),
                                        jnp.float32, -0.1, 0.1)
    return p


if __name__ == "__main__":
    root = jax.random.PRNGKey(0)
    pkey, k_ids, k_types = jax.random.split(root, 3)
    params = init_params(pkey)

    text_tokened = jax.random.randint(k_ids, (BATCH, SEQ), 0, VOCAB_SIZE,
                                      dtype=jnp.int32)
    token_type_list = jax.random.randint(k_types, (BATCH, SEQ), 0,
                                         NUM_TOKEN_TYPE, dtype=jnp.int32)
    mask_tokens = jnp.ones((BATCH, SEQ), dtype=jnp.bool_)

    fwd = jax.jit(seqlabel_forward)
    loss_ner, pred_ner = fwd(params, text_tokened, token_type_list, mask_tokens)
    jax.block_until_ready((loss_ner, pred_ner))
    assert pred_ner.shape == (BATCH, SEQ)
    assert jnp.isfinite(loss_ner)
    print("KERNEL_OK")
</pallas_src>

<mosaic_0001>
module attributes {stable_mosaic.version = 11 : i64} {
  func.func @bigru_ner_kernel(%arg0: memref<32x1xi32, #tpu.memory_space<vmem>>, %arg1: memref<64x32xf32, #tpu.memory_space<vmem>>, %arg2: memref<32x768xf32, #tpu.memory_space<vmem>>, %arg3: memref<1x768xf32, #tpu.memory_space<vmem>>, %arg4: memref<32x768xf32, #tpu.memory_space<vmem>>, %arg5: memref<1x768xf32, #tpu.memory_space<vmem>>, %arg6: memref<4x128xf32, #tpu.memory_space<vmem>>, %arg7: memref<128x32xf32, #tpu.memory_space<vmem>>, %arg8: memref<128x32xf32, #tpu.memory_space<vmem>>, %arg9: memref<1x32xf32, #tpu.memory_space<vmem>>, %arg10: memref<32x5xf32, #tpu.memory_space<vmem>>, %arg11: memref<1x5xf32, #tpu.memory_space<vmem>>, %arg12: memref<16x5xf32, #tpu.memory_space<vmem>>, %arg13: memref<32x768xf32, #tpu.memory_space<vmem>>, %arg14: memref<16x128xf32, #tpu.memory_space<vmem>>, %arg15: memref<16x128xf32, #tpu.memory_space<vmem>>) attributes {dimension_semantics = [], scalar_prefetch = 0 : i64, scratch_operands = 3 : i64, tpu.core_type = #tpu.core_type<tc>} {
    %c0 = arith.constant 0 : index
    %c0_0 = arith.constant 0 : index
    %0 = vector.load %arg0[%c0, %c0_0] : memref<32x1xi32, #tpu.memory_space<vmem>>, vector<32x1xi32>
    %1 = tpu.iota {dimensions = array<i32: 1>} : vector<32x64xi32>
    %2 = vector.broadcast %0 : vector<32x1xi32> to vector<32x64xi32>
    %3 = arith.cmpi eq, %1, %2 : vector<32x64xi32>
    %4 = arith.extui %3 : vector<32x64xi1> to vector<32x64xi32>
    %5 = arith.sitofp %4 : vector<32x64xi32> to vector<32x64xf32>
    %c0_1 = arith.constant 0 : index
    %c0_2 = arith.constant 0 : index
    %6 = vector.load %arg1[%c0_1, %c0_2] : memref<64x32xf32, #tpu.memory_space<vmem>>, vector<64x32xf32>
    %cst = arith.constant dense<0.000000e+00> : vector<32x32xf32>
    %7 = tpu.matmul %5, %6, %cst {dimension_numbers = #tpu.dot_dimension_numbers<[1], [0], [0], [1], [0, 0, 1, 1], [], []>} : vector<32x64xf32>, vector<64x32xf32>, vector<32x32xf32> -> vector<32x32xf32>
    %c0_3 = arith.constant 0 : index
    %c0_4 = arith.constant 0 : index
    %8 = vector.load %arg2[%c0_3, %c0_4] : memref<32x768xf32, #tpu.memory_space<vmem>>, vector<32x768xf32>
    %cst_5 = arith.constant dense<0.000000e+00> : vector<32x768xf32>
    %9 = tpu.matmul %7, %8, %cst_5 {dimension_numbers = #tpu.dot_dimension_numbers<[1], [0], [0], [1], [0, 0, 1, 1], [], []>} : vector<32x32xf32>, vector<32x768xf32>, vector<32x768xf32> -> vector<32x768xf32>
    %c0_6 = arith.constant 0 : index
    %c0_7 = arith.constant 0 : index
    %10 = vector.load %arg3[%c0_6, %c0_7] : memref<1x768xf32, #tpu.memory_space<vmem>>, vector<1x768xf32>
    %11 = vector.broadcast %10 : vector<1x768xf32> to vector<32x768xf32>
    %12 = arith.addf %9, %11 : vector<32x768xf32>
    %c0_8 = arith.constant 0 : index
    %c0_9 = arith.constant 0 : index
    %13 = vector.load %arg13[%c0_8, %c0_9] : memref<32x768xf32, #tpu.memory_space<vmem>>, vector<32x768xf32>
    tpu.vector_store %arg13[%c0_8, %c0_9], %12 {strides = array<i32>} : memref<32x768xf32, #tpu.memory_space<vmem>>, vector<32x768xf32>,
    %14 = tpu.iota {dimensions = array<i32: 0>} : vector<4x128xi32>
    %c2_i32 = arith.constant 2 : i32
    %15 = vector.broadcast %c2_i32 : i32 to vector<4x128xi32>
    %16 = arith.cmpi slt, %14, %15 : vector<4x128xi32>
    %c0_10 = arith.constant 0 : index
    %c0_11 = arith.constant 0 : index
    %17 = vector.load %arg6[%c0_10, %c0_11] : memref<4x128xf32, #tpu.memory_space<vmem>>, vector<4x128xf32>
    %c0_12 = arith.constant 0 : index
    %c0_13 = arith.constant 0 : index
    %18 = vector.load %arg13[%c0_12, %c0_13] : memref<32x768xf32, #tpu.memory_space<vmem>>, vector<4x768xf32>
    %19 = vector.extract_strided_slice %17 {offsets = [0, 0], sizes = [4, 32], strides = [1, 1]} : vector<4x128xf32> to vector<4x32xf32>
    %c0_14 = arith.constant 0 : index
    %c0_15 = arith.constant 0 : index
    %20 = vector.load %arg4[%c0_14, %c0_15] : memref<32x768xf32, #tpu.memory_space<vmem>>, vector<32x768xf32>
    %cst_16 = arith.constant dense<0.000000e+00> : vector<4x768xf32>
    %21 = tpu.matmul %19, %20, %cst_16 {dimension_numbers = #tpu.dot_dimension_numbers<[1], [0], [0], [1], [0, 0, 1, 1], [], []>} : vector<4x32xf32>, vector<32x768xf32>, vector<4x768xf32> -> vector<4x768xf32>
    %c0_17 = arith.constant 0 : index
    %c0_18 = arith.constant 0 : index
    %22 = vector.load %arg5[%c0_17, %c0_18] : memref<1x768xf32, #tpu.memory_space<vmem>>, vector<1x768xf32>
    %23 = vector.broadcast %22 : vector<1x768xf32> to vector<4x768xf32>
    %24 = arith.addf %21, %23 : vector<4x768xf32>
    %25 = vector.extract_strided_slice %18 {offsets = [0, 0], sizes = [4, 128], strides = [1, 1]} : vector<4x768xf32> to vector<4x128xf32>
    %26 = vector.extract_strided_slice %24 {offsets = [0, 0], sizes = [4, 128], strides = [1, 1]} : vector<4x768xf32> to vector<4x128xf32>
    %27 = arith.addf %25, %26 : vector<4x128xf32>
    %28 = arith.negf %27 : vector<4x128xf32>
    %29 = math.exp %28 : vector<4x128xf32>
    %cst_19 = arith.constant 1.000000e+00 : f32
    %30 = vector.broadcast %cst_19 : f32 to vector<4x128xf32>
    %31 = arith.addf %30, %29 : vector<4x128xf32>
    %32 = arith.divf %30, %31 : vector<4x128xf32>
    %33 = vector.extract_strided_slice %18 {offsets = [0, 128], sizes = [4, 128], strides = [1, 1]} : vector<4x768xf32> to vector<4x128xf32>
    %34 = vector.extract_strided_slice %24 {offsets = [0, 128], sizes = [4, 128], strides = [1, 1]} : vector<4x768xf32> to vector<4x128xf32>
    %35 = arith.addf %33, %34 : vector<4x128xf32>
    %36 = arith.negf %35 : vector<4x128xf32>
    %37 = math.exp %36 : vector<4x128xf32>
    %cst_20 = arith.constant 1.000000e+00 : f32
    %38 = vector.broadcast %cst_20 : f32 to vector<4x128xf32>
    %39 = arith.addf %38, %37 : vector<4x128xf32>
    %40 = arith.divf %38, %39 : vector<4x128xf32>
    %41 = vector.extract_strided_slice %18 {offsets = [0, 256], sizes = [4, 128], strides = [1, 1]} : vector<4x768xf32> to vector<4x128xf32>
    %42 = vector.extract_strided_slice %24 {offsets = [0, 256], sizes = [4, 128], strides = [1, 1]} : vector<4x768xf32> to vector<4x128xf32>
    %43 = arith.mulf %32, %42 : vector<4x128xf32>
    %44 = arith.addf %41, %43 : vector<4x128xf32>
    %45 = math.tanh %44 : vector<4x128xf32>
    %46 = vector.extract_strided_slice %18 {offsets = [0, 384], sizes = [4, 128], strides = [1, 1]} : vector<4x768xf32> to vector<4x128xf32>
    %47 = vector.extract_strided_slice %24 {offsets = [0, 384], sizes = [4, 128], strides = [1, 1]} : vector<4x768xf32> to vector<4x128xf32>
    %48 = arith.addf %46, %47 : vector<4x128xf32>
    %49 = arith.negf %48 : vector<4x128xf32>
    %50 = math.exp %49 : vector<4x128xf32>
    %cst_21 = arith.constant 1.000000e+00 : f32
    %51 = vector.broadcast %cst_21 : f32 to vector<4x128xf32>
    %52 = arith.addf %51, %50 : vector<4x128xf32>
    %53 = arith.divf %51, %52 : vector<4x128xf32>
    %54 = vector.extract_strided_slice %18 {offsets = [0, 512], sizes = [4, 128], strides = [1, 1]} : vector<4x768xf32> to vector<4x128xf32>
    %55 = vector.extract_strided_slice %24 {offsets = [0, 512], sizes = [4, 128], strides = [1, 1]} : vector<4x768xf32> to vector<4x128xf32>
    %56 = arith.addf %54, %55 : vector<4x128xf32>
    %57 = arith.negf %56 : vector<4x128xf32>
    %58 = math.exp %57 : vector<4x128xf32>
    %cst_22 = arith.constant 1.000000e+00 : f32
    %59 = vector.broadcast %cst_22 : f32 to vector<4x128xf32>
    %60 = arith.addf %59, %58 : vector<4x128xf32>
    %61 = arith.divf %59, %60 : vector<4x128xf32>
    %62 = vector.extract_strided_slice %18 {offsets = [0, 640], sizes = [4, 128], strides = [1, 1]} : vector<4x768xf32> to vector<4x128xf32>
    %63 = vector.extract_strided_slice %24 {offsets = [0, 640], sizes = [4, 128], strides = [1, 1]} : vector<4x768xf32> to vector<4x128xf32>
    %64 = arith.mulf %53, %63 : vector<4x128xf32>
    %65 = arith.addf %62, %64 : vector<4x128xf32>
    %66 = math.tanh %65 : vector<4x128xf32>
    %cst_23 = arith.constant 1.000000e+00 : f32
    %67 = vector.broadcast %cst_23 : f32 to vector<4x128xf32>
    %68 = arith.subf %67, %40 : vector<4x128xf32>
    %69 = arith.mulf %68, %45 : vector<4x128xf32>
    %70 = arith.mulf %40, %17 : vector<4x128xf32>
    %71 = arith.addf %69, %70 : vector<4x128xf32>
    %cst_24 = arith.constant 1.000000e+00 : f32
    %72 = vector.broadcast %cst_24 : f32 to vector<4x128xf32>
    %73 = arith.subf %72, %61 : vector<4x128xf32>
    %74 = arith.mulf %73, %66 : vector<4x128xf32>
    %75 = arith.mulf %61, %17 : vector<4x128xf32>
    %76 = arith.addf %74, %75 : vector<4x128xf32>
    %77 = arith.select %16, %71, %76 : vector<4x128xi1>, vector<4x128xf32>
    %78 = vector.extract_strided_slice %77 {offsets = [0, 0], sizes = [2, 128], strides = [1, 1]} : vector<4x128xf32> to vector<2x128xf32>
    %c0_25 = arith.constant 0 : index
    %c0_26 = arith.constant 0 : index
    %79 = vector.load %arg14[%c0_25, %c0_26] : memref<16x128xf32, #tpu.memory_space<vmem>>, vector<2x128xf32>
    tpu.vector_store %arg14[%c0_25, %c0_26], %78 {strides = array<i32>} : memref<16x128xf32, #tpu.memory_space<vmem>>, vector<2x128xf32>,
    %80 = vector.extract_strided_slice %77 {offsets = [2, 0], sizes = [2, 128], strides = [1, 1]} : vector<4x128xf32> to vector<2x128xf32>
    %c14 = arith.constant 14 : index
    %c0_27 = arith.constant 0 : index
    %81 = vector.load %arg15[%c14, %c0_27] : memref<16x128xf32, #tpu.memory_space<vmem>>, vector<2x128xf32>
    tpu.vector_store %arg15[%c14, %c0_27], %80 {strides = array<i32>} : memref<16x128xf32, #tpu.memory_space<vmem>>, vector<2x128xf32>,
    %c4 = arith.constant 4 : index
    %c0_28 = arith.constant 0 : index
    %82 = vector.load %arg13[%c4, %c0_28] : memref<32x768xf32, #tpu.memory_space<vmem>>, vector<4x768xf32>
    %83 = vector.extract_strided_slice %77 {offsets = [0, 0], sizes = [4, 32], strides = [1, 1]} : vector<4x128xf32> to vector<4x32xf32>
    %c0_29 = arith.constant 0 : index
    %c0_30 = arith.constant 0 : index
    %84 = vector.load %arg4[%c0_29, %c0_30] : memref<32x768xf32, #tpu.memory_space<vmem>>, vector<32x768xf32>
    %cst_31 = arith.constant dense<0.000000e+00> : vector<4x768xf32>
    %85 = tpu.matmul %83, %84, %cst_31 {dimension_numbers = #tpu.dot_dimension_numbers<[1], [0], [0], [1], [0, 0, 1, 1], [], []>} : vector<4x32xf32>, vector<32x768xf32>, vector<4x768xf32> -> vector<4x768xf32>
    %c0_32 = arith.constant 0 : index
    %c0_33 = arith.constant 0 : index
    %86 = vector.load %arg5[%c0_32, %c0_33] : memref<1x768xf32, #tpu.memory_space<vmem>>, vector<1x768xf32>
    %87 = vector.broadcast %86 : vector<1x768xf32> to vector<4x768xf32>
    %88 = arith.addf %85, %87 : vector<4x768xf32>
    %89 = vector.extract_strided_slice %82 {offsets = [0, 0], sizes = [4, 128], strides = [1, 1]} : vector<4x768xf32> to vector<4x128xf32>
    %90 = vector.extract_strided_slice %88 {offsets = [0, 0], sizes = [4, 128], strides = [1, 1]} : vector<4x768xf32> to vector<4x128xf32>
    %91 = arith.addf %89, %90 : vector<4x128xf32>
    %92 = arith.negf %91 : vector<4x128xf32>
    %93 = math.exp %92 : vector<4x128xf32>
    %cst_34 = arith.constant 1.000000e+00 : f32
    %94 = vector.broadcast %cst_34 : f32 to vector<4x128xf32>
    %95 = arith.addf %94, %93 : vector<4x128xf32>
    %96 = arith.divf %94, %95 : vector<4x128xf32>
    %97 = vector.extract_strided_slice %82 {offsets = [0, 128], sizes = [4, 128], strides = [1, 1]} : vector<4x768xf32> to vector<4x128xf32>
    %98 = vector.extract_strided_slice %88 {offsets = [0, 128], sizes = [4, 128], strides = [1, 1]} : vector<4x768xf32> to vector<4x128xf32>
    %99 = arith.addf %97, %98 : vector<4x128xf32>
    %100 = arith.negf %99 : vector<4x128xf32>
    %101 = math.exp %100 : vector<4x128xf32>
    %cst_35 = arith.constant 1.000000e+00 : f32
    %102 = vector.broadcast %cst_35 : f32 to vector<4x128xf32>
    %103 = arith.addf %102, %101 : vector<4x128xf32>
    %104 = arith.divf %102, %103 : vector<4x128xf32>
    %105 = vector.extract_strided_slice %82 {offsets = [0, 256], sizes = [4, 128], strides = [1, 1]} : vector<4x768xf32> to vector<4x128xf32>
    %106 = vector.extract_strided_slice %88 {offsets = [0, 256], sizes = [4, 128], strides = [1, 1]} : vector<4x768xf32> to vector<4x128xf32>
    %107 = arith.mulf %96, %106 : vector<4x128xf32>
    %108 = arith.addf %105, %107 : vector<4x128xf32>
    %109 = math.tanh %108 : vector<4x128xf32>
    %110 = vector.extract_strided_slice %82 {offsets = [0, 384], sizes = [4, 128], strides = [1, 1]} : vector<4x768xf32> to vector<4x128xf32>
    %111 = vector.extract_strided_slice %88 {offsets = [0, 384], sizes = [4, 128], strides = [1, 1]} : vector<4x768xf32> to vector<4x128xf32>
    %112 = arith.addf %110, %111 : vector<4x128xf32>
    %113 = arith.negf %112 : vector<4x128xf32>
    %114 = math.exp %113 : vector<4x128xf32>
    %cst_36 = arith.constant 1.000000e+00 : f32
    %115 = vector.broadcast %cst_36 : f32 to vector<4x128xf32>
    %116 = arith.addf %115, %114 : vector<4x128xf32>
    %117 = arith.divf %115, %116 : vector<4x128xf32>
    %118 = vector.extract_strided_slice %82 {offsets = [0, 512], sizes = [4, 128], strides = [1, 1]} : vector<4x768xf32> to vector<4x128xf32>
    %119 = vector.extract_strided_slice %88 {offsets = [0, 512], sizes = [4, 128], strides = [1, 1]} : vector<4x768xf32> to vector<4x128xf32>
    %120 = arith.addf %118, %119 : vector<4x128xf32>
    %121 = arith.negf %120 : vector<4x128xf32>
    %122 = math.exp %121 : vector<4x128xf32>
    %cst_37 = arith.constant 1.000000e+00 : f32
    %123 = vector.broadcast %cst_37 : f32 to vector<4x128xf32>
    %124 = arith.addf %123, %122 : vector<4x128xf32>
    %125 = arith.divf %123, %124 : vector<4x128xf32>
    %126 = vector.extract_strided_slice %82 {offsets = [0, 640], sizes = [4, 128], strides = [1, 1]} : vector<4x768xf32> to vector<4x128xf32>
    %127 = vector.extract_strided_slice %88 {offsets = [0, 640], sizes = [4, 128], strides = [1, 1]} : vector<4x768xf32> to vector<4x128xf32>
    %128 = arith.mulf %117, %127 : vector<4x128xf32>
    %129 = arith.addf %126, %128 : vector<4x128xf32>
    %130 = math.tanh %129 : vector<4x128xf32>
    %cst_38 = arith.constant 1.000000e+00 : f32
    %131 = vector.broadcast %cst_38 : f32 to vector<4x128xf32>
    %132 = arith.subf %131, %104 : vector<4x128xf32>
    %133 = arith.mulf %132, %109 : vector<4x128xf32>
    %134 = arith.mulf %104, %77 : vector<4x128xf32>
    %135 = arith.addf %133, %134 : vector<4x128xf32>
    %cst_39 = arith.constant 1.000000e+00 : f32
    %136 = vector.broadcast %cst_39 : f32 to vector<4x128xf32>
    %137 = arith.subf %136, %125 : vector<4x128xf32>
    %138 = arith.mulf %137, %130 : vector<4x128xf32>
    %139 = arith.mulf %125, %77 : vector<4x128xf32>
    %140 = arith.addf %138, %139 : vector<4x128xf32>
    %141 = arith.select %16, %135, %140 : vector<4x128xi1>, vector<4x128xf32>
    %142 = vector.extract_strided_slice %141 {offsets = [0, 0], sizes = [2, 128], strides = [1, 1]} : vector<4x128xf32> to vector<2x128xf32>
    %c2 = arith.constant 2 : index
    %c0_40 = arith.constant 0 : index
    %143 = vector.load %arg14[%c2, %c0_40] : memref<16x128xf32, #tpu.memory_space<vmem>>, vector<2x128xf32>
    tpu.vector_store %arg14[%c2, %c0_40], %142 {strides = array<i32>} : memref<16x128xf32, #tpu.memory_space<vmem>>, vector<2x128xf32>,
    %144 = vector.extract_strided_slice %141 {offsets = [2, 0], sizes = [2, 128], strides = [1, 1]} : vector<4x128xf32> to vector<2x128xf32>
    %c12 = arith.constant 12 : index
    %c0_41 = arith.constant 0 : index
    %145 = vector.load %arg15[%c12, %c0_41] : memref<16x128xf32, #tpu.memory_space<vmem>>, vector<2x128xf32>
    tpu.vector_store %arg15[%c12, %c0_41], %144 {strides = array<i32>} : memref<16x128xf32, #tpu.memory_space<vmem>>, vector<2x128xf32>,
    %c8 = arith.constant 8 : index
    %c0_42 = arith.constant 0 : index
    %146 = vector.load %arg13[%c8, %c0_42] : memref<32x768xf32, #tpu.memory_space<vmem>>, vector<4x768xf32>
    %147 = vector.extract_strided_slice %141 {offsets = [0, 0], sizes = [4, 32], strides = [1, 1]} : vector<4x128xf32> to vector<4x32xf32>
    %c0_43 = arith.constant 0 : index
    %c0_44 = arith.constant 0 : index
    %148 = vector.load %arg4[%c0_43, %c0_44] : memref<32x768xf32, #tpu.memory_space<vmem>>, vector<32x768xf32>
    %cst_45 = arith.constant dense<0.000000e+00> : vector<4x768xf32>
    %149 = tpu.matmul %147, %148, %cst_45 {dimension_numbers = #tpu.dot_dimension_numbers<[1], [0], [0], [1], [0, 0, 1, 1], [], []>} : vector<4x32xf32>, vector<32x768xf32>, vector<4x768xf32> -> vector<4x768xf32>
    %c0_46 = arith.constant 0 : index
    %c0_47 = arith.constant 0 : index
    %150 = vector.load %arg5[%c0_46, %c0_47] : memref<1x768xf32, #tpu.memory_space<vmem>>, vector<1x768xf32>
    %151 = vector.broadcast %150 : vector<1x768xf32> to vector<4x768xf32>
    %152 = arith.addf %149, %151 : vector<4x768xf32>
    %153 = vector.extract_strided_slice %146 {offsets = [0, 0], sizes = [4, 128], strides = [1, 1]} : vector<4x768xf32> to vector<4x128xf32>
    %154 = vector.extract_strided_slice %152 {offsets = [0, 0], sizes = [4, 128], strides = [1, 1]} : vector<4x768xf32> to vector<4x128xf32>
    %155 = arith.addf %153, %154 : vector<4x128xf32>
    %156 = arith.negf %155 : vector<4x128xf32>
    %157 = math.exp %156 : vector<4x128xf32>
    %cst_48 = arith.constant 1.000000e+00 : f32
    %158 = vector.broadcast %cst_48 : f32 to vector<4x128xf32>
    %159 = arith.addf %158, %157 : vector<4x128xf32>
    %160 = arith.divf %158, %159 : vector<4x128xf32>
    %161 = vector.extract_strided_slice %146 {offsets = [0, 128], sizes = [4, 128], strides = [1, 1]} : vector<4x768xf32> to vector<4x128xf32>
    %162 = vector.extract_strided_slice %152 {offsets = [0, 128], sizes = [4, 128], strides = [1, 1]} : vector<4x768xf32> to vector<4x128xf32>
    %163 = arith.addf %161, %162 : vector<4x128xf32>
    %164 = arith.negf %163 : vector<4x128xf32>
    %165 = math.exp %164 : vector<4x128xf32>
    %cst_49 = arith.constant 1.000000e+00 : f32
    %166 = vector.broadcast %cst_49 : f32 to vector<4x128xf32>
    %167 = arith.addf %166, %165 : vector<4x128xf32>
    %168 = arith.divf %166, %167 : vector<4x128xf32>
    %169 = vector.extract_strided_slice %146 {offsets = [0, 256], sizes = [4, 128], strides = [1, 1]} : vector<4x768xf32> to vector<4x128xf32>
    %170 = vector.extract_strided_slice %152 {offsets = [0, 256], sizes = [4, 128], strides = [1, 1]} : vector<4x768xf32> to vector<4x128xf32>
    %171 = arith.mulf %160, %170 : vector<4x128xf32>
    %172 = arith.addf %169, %171 : vector<4x128xf32>
    %173 = math.tanh %172 : vector<4x128xf32>
    %174 = vector.extract_strided_slice %146 {offsets = [0, 384], sizes = [4, 128], strides = [1, 1]} : vector<4x768xf32> to vector<4x128xf32>
    %175 = vector.extract_strided_slice %152 {offsets = [0, 384], sizes = [4, 128], strides = [1, 1]} : vector<4x768xf32> to vector<4x128xf32>
    %176 = arith.addf %174, %175 : vector<4x128xf32>
    %177 = arith.negf %176 : vector<4x128xf32>
    %178 = math.exp %177 : vector<4x128xf32>
    %cst_50 = arith.constant 1.000000e+00 : f32
    %179 = vector.broadcast %cst_50 : f32 to vector<4x128xf32>
    %180 = arith.addf %179, %178 : vector<4x128xf32>
    %181 = arith.divf %179, %180 : vector<4x128xf32>
    %182 = vector.extract_strided_slice %146 {offsets = [0, 512], sizes = [4, 128], strides = [1, 1]} : vector<4x768xf32> to vector<4x128xf32>
    %183 = vector.extract_strided_slice %152 {offsets = [0, 512], sizes = [4, 128], strides = [1, 1]} : vector<4x768xf32> to vector<4x128xf32>
    %184 = arith.addf %182, %183 : vector<4x128xf32>
    %185 = arith.negf %184 : vector<4x128xf32>
    %186 = math.exp %185 : vector<4x128xf32>
    %cst_51 = arith.constant 1.000000e+00 : f32
    %187 = vector.broadcast %cst_51 : f32 to vector<4x128xf32>
    %188 = arith.addf %187, %186 : vector<4x128xf32>
    %189 = arith.divf %187, %188 : vector<4x128xf32>
    %190 = vector.extract_strided_slice %146 {offsets = [0, 640], sizes = [4, 128], strides = [1, 1]} : vector<4x768xf32> to vector<4x128xf32>
    %191 = vector.extract_strided_slice %152 {offsets = [0, 640], sizes = [4, 128], strides = [1, 1]} : vector<4x768xf32> to vector<4x128xf32>
    %192 = arith.mulf %181, %191 : vector<4x128xf32>
    %193 = arith.addf %190, %192 : vector<4x128xf32>
    %194 = math.tanh %193 : vector<4x128xf32>
    %cst_52 = arith.constant 1.000000e+00 : f32
    %195 = vector.broadcast %cst_52 : f32 to vector<4x128xf32>
    %196 = arith.subf %195, %168 : vector<4x128xf32>
    %197 = arith.mulf %196, %173 : vector<4x128xf32>
    %198 = arith.mulf %168, %141 : vector<4x128xf32>
    %199 = arith.addf %197, %198 : vector<4x128xf32>
    %cst_53 = arith.constant 1.000000e+00 : f32
    %200 = vector.broadcast %cst_53 : f32 to vector<4x128xf32>
    %201 = arith.subf %200, %189 : vector<4x128xf32>
    %202 = arith.mulf %201, %194 : vector<4x128xf32>
    %203 = arith.mulf %189, %141 : vector<4x128xf32>
    %204 = arith.addf %202, %203 : vector<4x128xf32>
    %205 = arith.select %16, %199, %204 : vector<4x128xi1>, vector<4x128xf32>
    %206 = vector.extract_strided_slice %205 {offsets = [0, 0], sizes = [2, 128], strides = [1, 1]} : vector<4x128xf32> to vector<2x128xf32>
    %c4_54 = arith.constant 4 : index
    %c0_55 = arith.constant 0 : index
    %207 = vector.load %arg14[%c4_54, %c0_55] : memref<16x128xf32, #tpu.memory_space<vmem>>, vector<2x128xf32>
    tpu.vector_store %arg14[%c4_54, %c0_55], %206 {strides = array<i32>} : memref<16x128xf32, #tpu.memory_space<vmem>>, vector<2x128xf32>,
    %208 = vector.extract_strided_slice %205 {offsets = [2, 0], sizes = [2, 128], strides = [1, 1]} : vector<4x128xf32> to vector<2x128xf32>
    %c10 = arith.constant 10 : index
    %c0_56 = arith.constant 0 : index
    %209 = vector.load %arg15[%c10, %c0_56] : memref<16x128xf32, #tpu.memory_space<vmem>>, vector<2x128xf32>
    tpu.vector_store %arg15[%c10, %c0_56], %208 {strides = array<i32>} : memref<16x128xf32, #tpu.memory_space<vmem>>, vector<2x128xf32>,
    %c12_57 = arith.constant 12 : index
    %c0_58 = arith.constant 0 : index
    %210 = vector.load %arg13[%c12_57, %c0_58] : memref<32x768xf32, #tpu.memory_space<vmem>>, vector<4x768xf32>
    %211 = vector.extract_strided_slice %205 {offsets = [0, 0], sizes = [4, 32], strides = [1, 1]} : vector<4x128xf32> to vector<4x32xf32>
    %c0_59 = arith.constant 0 : index
    %c0_60 = arith.constant 0 : index
    %212 = vector.load %arg4[%c0_59, %c0_60] : memref<32x768xf32, #tpu.memory_space<vmem>>, vector<32x768xf32>
    %cst_61 = arith.constant dense<0.000000e+00> : vector<4x768xf32>
    %213 = tpu.matmul %211, %212, %cst_61 {dimension_numbers = #tpu.dot_dimension_numbers<[1], [0], [0], [1], [0, 0, 1, 1], [], []>} : vector<4x32xf32>, vector<32x768xf32>, vector<4x768xf32> -> vector<4x768xf32>
    %c0_62 = arith.constant 0 : index
    %c0_63 = arith.constant 0 : index
    %214 = vector.load %arg5[%c0_62, %c0_63] : memref<1x768xf32, #tpu.memory_space<vmem>>, vector<1x768xf32>
    %215 = vector.broadcast %214 : vector<1x768xf32> to vector<4x768xf32>
    %216 = arith.addf %213, %215 : vector<4x768xf32>
    %217 = vector.extract_strided_slice %210 {offsets = [0, 0], sizes = [4, 128], strides = [1, 1]} : vector<4x768xf32> to vector<4x128xf32>
    %218 = vector.extract_strided_slice %216 {offsets = [0, 0], sizes = [4, 128], strides = [1, 1]} : vector<4x768xf32> to vector<4x128xf32>
    %219 = arith.addf %217, %218 : vector<4x128xf32>
    %220 = arith.negf %219 : vector<4x128xf32>
    %221 = math.exp %220 : vector<4x128xf32>
    %cst_64 = arith.constant 1.000000e+00 : f32
    %222 = vector.broadcast %cst_64 : f32 to vector<4x128xf32>
    %223 = arith.addf %222, %221 : vector<4x128xf32>
    %224 = arith.divf %222, %223 : vector<4x128xf32>
    %225 = vector.extract_strided_slice %210 {offsets = [0, 128], sizes = [4, 128], strides = [1, 1]} : vector<4x768xf32> to vector<4x128xf32>
    %226 = vector.extract_strided_slice %216 {offsets = [0, 128], sizes = [4, 128], strides = [1, 1]} : vector<4x768xf32> to vector<4x128xf32>
    %227 = arith.addf %225, %226 : vector<4x128xf32>
    %228 = arith.negf %227 : vector<4x128xf32>
    %229 = math.exp %228 : vector<4x128xf32>
    %cst_65 = arith.constant 1.000000e+00 : f32
    %230 = vector.broadcast %cst_65 : f32 to vector<4x128xf32>
    %231 = arith.addf %230, %229 : vector<4x128xf32>
    %232 = arith.divf %230, %231 : vector<4x128xf32>
    %233 = vector.extract_strided_slice %210 {offsets = [0, 256], sizes = [4, 128], strides = [1, 1]} : vector<4x768xf32> to vector<4x128xf32>
    %234 = vector.extract_strided_slice %216 {offsets = [0, 256], sizes = [4, 128], strides = [1, 1]} : vector<4x768xf32> to vector<4x128xf32>
    %235 = arith.mulf %224, %234 : vector<4x128xf32>
    %236 = arith.addf %233, %235 : vector<4x128xf32>
    %237 = math.tanh %236 : vector<4x128xf32>
    %238 = vector.extract_strided_slice %210 {offsets = [0, 384], sizes = [4, 128], strides = [1, 1]} : vector<4x768xf32> to vector<4x128xf32>
    %239 = vector.extract_strided_slice %216 {offsets = [0, 384], sizes = [4, 128], strides = [1, 1]} : vector<4x768xf32> to vector<4x128xf32>
    %240 = arith.addf %238, %239 : vector<4x128xf32>
    %241 = arith.negf %240 : vector<4x128xf32>
    %242 = math.exp %241 : vector<4x128xf32>
    %cst_66 = arith.constant 1.000000e+00 : f32
    %243 = vector.broadcast %cst_66 : f32 to vector<4x128xf32>
    %244 = arith.addf %243, %242 : vector<4x128xf32>
    %245 = arith.divf %243, %244 : vector<4x128xf32>
    %246 = vector.extract_strided_slice %210 {offsets = [0, 512], sizes = [4, 128], strides = [1, 1]} : vector<4x768xf32> to vector<4x128xf32>
    %247 = vector.extract_strided_slice %216 {offsets = [0, 512], sizes = [4, 128], strides = [1, 1]} : vector<4x768xf32> to vector<4x128xf32>
    %248 = arith.addf %246, %247 : vector<4x128xf32>
    %249 = arith.negf %248 : vector<4x128xf32>
    %250 = math.exp %249 : vector<4x128xf32>
    %cst_67 = arith.constant 1.000000e+00 : f32
    %251 = vector.broadcast %cst_67 : f32 to vector<4x128xf32>
    %252 = arith.addf %251, %250 : vector<4x128xf32>
    %253 = arith.divf %251, %252 : vector<4x128xf32>
    %254 = vector.extract_strided_slice %210 {offsets = [0, 640], sizes = [4, 128], strides = [1, 1]} : vector<4x768xf32> to vector<4x128xf32>
    %255 = vector.extract_strided_slice %216 {offsets = [0, 640], sizes = [4, 128], strides = [1, 1]} : vector<4x768xf32> to vector<4x128xf32>
    %256 = arith.mulf %245, %255 : vector<4x128xf32>
    %257 = arith.addf %254, %256 : vector<4x128xf32>
    %258 = math.tanh %257 : vector<4x128xf32>
    %cst_68 = arith.constant 1.000000e+00 : f32
    %259 = vector.broadcast %cst_68 : f32 to vector<4x128xf32>
    %260 = arith.subf %259, %232 : vector<4x128xf32>
    %261 = arith.mulf %260, %237 : vector<4x128xf32>
    %262 = arith.mulf %232, %205 : vector<4x128xf32>
    %263 = arith.addf %261, %262 : vector<4x128xf32>
    %cst_69 = arith.constant 1.000000e+00 : f32
    %264 = vector.broadcast %cst_69 : f32 to vector<4x128xf32>
    %265 = arith.subf %264, %253 : vector<4x128xf32>
    %266 = arith.mulf %265, %258 : vector<4x128xf32>
    %267 = arith.mulf %253, %205 : vector<4x128xf32>
    %268 = arith.addf %266, %267 : vector<4x128xf32>
    %269 = arith.select %16, %263, %268 : vector<4x128xi1>, vector<4x128xf32>
    %270 = vector.extract_strided_slice %269 {offsets = [0, 0], sizes = [2, 128], strides = [1, 1]} : vector<4x128xf32> to vector<2x128xf32>
    %c6 = arith.constant 6 : index
    %c0_70 = arith.constant 0 : index
    %271 = vector.load %arg14[%c6, %c0_70] : memref<16x128xf32, #tpu.memory_space<vmem>>, vector<2x128xf32>
    tpu.vector_store %arg14[%c6, %c0_70], %270 {strides = array<i32>} : memref<16x128xf32, #tpu.memory_space<vmem>>, vector<2x128xf32>,
    %272 = vector.extract_strided_slice %269 {offsets = [2, 0], sizes = [2, 128], strides = [1, 1]} : vector<4x128xf32> to vector<2x128xf32>
    %c8_71 = arith.constant 8 : index
    %c0_72 = arith.constant 0 : index
    %273 = vector.load %arg15[%c8_71, %c0_72] : memref<16x128xf32, #tpu.memory_space<vmem>>, vector<2x128xf32>
    tpu.vector_store %arg15[%c8_71, %c0_72], %272 {strides = array<i32>} : memref<16x128xf32, #tpu.memory_space<vmem>>, vector<2x128xf32>,
    %c16 = arith.constant 16 : index
    %c0_73 = arith.constant 0 : index
    %274 = vector.load %arg13[%c16, %c0_73] : memref<32x768xf32, #tpu.memory_space<vmem>>, vector<4x768xf32>
    %275 = vector.extract_strided_slice %269 {offsets = [0, 0], sizes = [4, 32], strides = [1, 1]} : vector<4x128xf32> to vector<4x32xf32>
    %c0_74 = arith.constant 0 : index
    %c0_75 = arith.constant 0 : index
    %276 = vector.load %arg4[%c0_74, %c0_75] : memref<32x768xf32, #tpu.memory_space<vmem>>, vector<32x768xf32>
    %cst_76 = arith.constant dense<0.000000e+00> : vector<4x768xf32>
    %277 = tpu.matmul %275, %276, %cst_76 {dimension_numbers = #tpu.dot_dimension_numbers<[1], [0], [0], [1], [0, 0, 1, 1], [], []>} : vector<4x32xf32>, vector<32x768xf32>, vector<4x768xf32> -> vector<4x768xf32>
    %c0_77 = arith.constant 0 : index
    %c0_78 = arith.constant 0 : index
    %278 = vector.load %arg5[%c0_77, %c0_78] : memref<1x768xf32, #tpu.memory_space<vmem>>, vector<1x768xf32>
    %279 = vector.broadcast %278 : vector<1x768xf32> to vector<4x768xf32>
    %280 = arith.addf %277, %279 : vector<4x768xf32>
    %281 = vector.extract_strided_slice %274 {offsets = [0, 0], sizes = [4, 128], strides = [1, 1]} : vector<4x768xf32> to vector<4x128xf32>
    %282 = vector.extract_strided_slice %280 {offsets = [0, 0], sizes = [4, 128], strides = [1, 1]} : vector<4x768xf32> to vector<4x128xf32>
    %283 = arith.addf %281, %282 : vector<4x128xf32>
    %284 = arith.negf %283 : vector<4x128xf32>
    %285 = math.exp %284 : vector<4x128xf32>
    %cst_79 = arith.constant 1.000000e+00 : f32
    %286 = vector.broadcast %cst_79 : f32 to vector<4x128xf32>
    %287 = arith.addf %286, %285 : vector<4x128xf32>
    %288 = arith.divf %286, %287 : vector<4x128xf32>
    %289 = vector.extract_strided_slice %274 {offsets = [0, 128], sizes = [4, 128], strides = [1, 1]} : vector<4x768xf32> to vector<4x128xf32>
    %290 = vector.extract_strided_slice %280 {offsets = [0, 128], sizes = [4, 128], strides = [1, 1]} : vector<4x768xf32> to vector<4x128xf32>
    %291 = arith.addf %289, %290 : vector<4x128xf32>
    %292 = arith.negf %291 : vector<4x128xf32>
    %293 = math.exp %292 : vector<4x128xf32>
    %cst_80 = arith.constant 1.000000e+00 : f32
    %294 = vector.broadcast %cst_80 : f32 to vector<4x128xf32>
    %295 = arith.addf %294, %293 : vector<4x128xf32>
    %296 = arith.divf %294, %295 : vector<4x128xf32>
    %297 = vector.extract_strided_slice %274 {offsets = [0, 256], sizes = [4, 128], strides = [1, 1]} : vector<4x768xf32> to vector<4x128xf32>
    %298 = vector.extract_strided_slice %280 {offsets = [0, 256], sizes = [4, 128], strides = [1, 1]} : vector<4x768xf32> to vector<4x128xf32>
    %299 = arith.mulf %288, %298 : vector<4x128xf32>
    %300 = arith.addf %297, %299 : vector<4x128xf32>
    %301 = math.tanh %300 : vector<4x128xf32>
    %302 = vector.extract_strided_slice %274 {offsets = [0, 384], sizes = [4, 128], strides = [1, 1]} : vector<4x768xf32> to vector<4x128xf32>
    %303 = vector.extract_strided_slice %280 {offsets = [0, 384], sizes = [4, 128], strides = [1, 1]} : vector<4x768xf32> to vector<4x128xf32>
    %304 = arith.addf %302, %303 : vector<4x128xf32>
    %305 = arith.negf %304 : vector<4x128xf32>
    %306 = math.exp %305 : vector<4x128xf32>
    %cst_81 = arith.constant 1.000000e+00 : f32
    %307 = vector.broadcast %cst_81 : f32 to vector<4x128xf32>
    %308 = arith.addf %307, %306 : vector<4x128xf32>
    %309 = arith.divf %307, %308 : vector<4x128xf32>
    %310 = vector.extract_strided_slice %274 {offsets = [0, 512], sizes = [4, 128], strides = [1, 1]} : vector<4x768xf32> to vector<4x128xf32>
    %311 = vector.extract_strided_slice %280 {offsets = [0, 512], sizes = [4, 128], strides = [1, 1]} : vector<4x768xf32> to vector<4x128xf32>
    %312 = arith.addf %310, %311 : vector<4x128xf32>
    %313 = arith.negf %312 : vector<4x128xf32>
    %314 = math.exp %313 : vector<4x128xf32>
    %cst_82 = arith.constant 1.000000e+00 : f32
    %315 = vector.broadcast %cst_82 : f32 to vector<4x128xf32>
    %316 = arith.addf %315, %314 : vector<4x128xf32>
    %317 = arith.divf %315, %316 : vector<4x128xf32>
    %318 = vector.extract_strided_slice %274 {offsets = [0, 640], sizes = [4, 128], strides = [1, 1]} : vector<4x768xf32> to vector<4x128xf32>
    %319 = vector.extract_strided_slice %280 {offsets = [0, 640], sizes = [4, 128], strides = [1, 1]} : vector<4x768xf32> to vector<4x128xf32>
    %320 = arith.mulf %309, %319 : vector<4x128xf32>
    %321 = arith.addf %318, %320 : vector<4x128xf32>
    %322 = math.tanh %321 : vector<4x128xf32>
    %cst_83 = arith.constant 1.000000e+00 : f32
    %323 = vector.broadcast %cst_83 : f32 to vector<4x128xf32>
    %324 = arith.subf %323, %296 : vector<4x128xf32>
    %325 = arith.mulf %324, %301 : vector<4x128xf32>
    %326 = arith.mulf %296, %269 : vector<4x128xf32>
    %327 = arith.addf %325, %326 : vector<4x128xf32>
    %cst_84 = arith.constant 1.000000e+00 : f32
    %328 = vector.broadcast %cst_84 : f32 to vector<4x128xf32>
    %329 = arith.subf %328, %317 : vector<4x128xf32>
    %330 = arith.mulf %329, %322 : vector<4x128xf32>
    %331 = arith.mulf %317, %269 : vector<4x128xf32>
    %332 = arith.addf %330, %331 : vector<4x128xf32>
    %333 = arith.select %16, %327, %332 : vector<4x128xi1>, vector<4x128xf32>
    %334 = vector.extract_strided_slice %333 {offsets = [0, 0], sizes = [2, 128], strides = [1, 1]} : vector<4x128xf32> to vector<2x128xf32>
    %c8_85 = arith.constant 8 : index
    %c0_86 = arith.constant 0 : index
    %335 = vector.load %arg14[%c8_85, %c0_86] : memref<16x128xf32, #tpu.memory_space<vmem>>, vector<2x128xf32>
    tpu.vector_store %arg14[%c8_85, %c0_86], %334 {strides = array<i32>} : memref<16x128xf32, #tpu.memory_space<vmem>>, vector<2x128xf32>,
    %336 = vector.extract_strided_slice %333 {offsets = [2, 0], sizes = [2, 128], strides = [1, 1]} : vector<4x128xf32> to vector<2x128xf32>
    %c6_87 = arith.constant 6 : index
    %c0_88 = arith.constant 0 : index
    %337 = vector.load %arg15[%c6_87, %c0_88] : memref<16x128xf32, #tpu.memory_space<vmem>>, vector<2x128xf32>
    tpu.vector_store %arg15[%c6_87, %c0_88], %336 {strides = array<i32>} : memref<16x128xf32, #tpu.memory_space<vmem>>, vector<2x128xf32>,
    %c20 = arith.constant 20 : index
    %c0_89 = arith.constant 0 : index
    %338 = vector.load %arg13[%c20, %c0_89] : memref<32x768xf32, #tpu.memory_space<vmem>>, vector<4x768xf32>
    %339 = vector.extract_strided_slice %333 {offsets = [0, 0], sizes = [4, 32], strides = [1, 1]} : vector<4x128xf32> to vector<4x32xf32>
    %c0_90 = arith.constant 0 : index
    %c0_91 = arith.constant 0 : index
    %340 = vector.load %arg4[%c0_90, %c0_91] : memref<32x768xf32, #tpu.memory_space<vmem>>, vector<32x768xf32>
    %cst_92 = arith.constant dense<0.000000e+00> : vector<4x768xf32>
    %341 = tpu.matmul %339, %340, %cst_92 {dimension_numbers = #tpu.dot_dimension_numbers<[1], [0], [0], [1], [0, 0, 1, 1], [], []>} : vector<4x32xf32>, vector<32x768xf32>, vector<4x768xf32> -> vector<4x768xf32>
    %c0_93 = arith.constant 0 : index
    %c0_94 = arith.constant 0 : index
    %342 = vector.load %arg5[%c0_93, %c0_94] : memref<1x768xf32, #tpu.memory_space<vmem>>, vector<1x768xf32>
    %343 = vector.broadcast %342 : vector<1x768xf32> to vector<4x768xf32>
    %344 = arith.addf %341, %343 : vector<4x768xf32>
    %345 = vector.extract_strided_slice %338 {offsets = [0, 0], sizes = [4, 128], strides = [1, 1]} : vector<4x768xf32> to vector<4x128xf32>
    %346 = vector.extract_strided_slice %344 {offsets = [0, 0], sizes = [4, 128], strides = [1, 1]} : vector<4x768xf32> to vector<4x128xf32>
    %347 = arith.addf %345, %346 : vector<4x128xf32>
    %348 = arith.negf %347 : vector<4x128xf32>
    %349 = math.exp %348 : vector<4x128xf32>
    %cst_95 = arith.constant 1.000000e+00 : f32
    %350 = vector.broadcast %cst_95 : f32 to vector<4x128xf32>
    %351 = arith.addf %350, %349 : vector<4x128xf32>
    %352 = arith.divf %350, %351 : vector<4x128xf32>
    %353 = vector.extract_strided_slice %338 {offsets = [0, 128], sizes = [4, 128], strides = [1, 1]} : vector<4x768xf32> to vector<4x128xf32>
    %354 = vector.extract_strided_slice %344 {offsets = [0, 128], sizes = [4, 128], strides = [1, 1]} : vector<4x768xf32> to vector<4x128xf32>
    %355 = arith.addf %353, %354 : vector<4x128xf32>
    %356 = arith.negf %355 : vector<4x128xf32>
    %357 = math.exp %356 : vector<4x128xf32>
    %cst_96 = arith.constant 1.000000e+00 : f32
    %358 = vector.broadcast %cst_96 : f32 to vector<4x128xf32>
    %359 = arith.addf %358, %357 : vector<4x128xf32>
    %360 = arith.divf %358, %359 : vector<4x128xf32>
    %361 = vector.extract_strided_slice %338 {offsets = [0, 256], sizes = [4, 128], strides = [1, 1]} : vector<4x768xf32> to vector<4x128xf32>
    %362 = vector.extract_strided_slice %344 {offsets = [0, 256], sizes = [4, 128], strides = [1, 1]} : vector<4x768xf32> to vector<4x128xf32>
    %363 = arith.mulf %352, %362 : vector<4x128xf32>
    %364 = arith.addf %361, %363 : vector<4x128xf32>
    %365 = math.tanh %364 : vector<4x128xf32>
    %366 = vector.extract_strided_slice %338 {offsets = [0, 384], sizes = [4, 128], strides = [1, 1]} : vector<4x768xf32> to vector<4x128xf32>
    %367 = vector.extract_strided_slice %344 {offsets = [0, 384], sizes = [4, 128], strides = [1, 1]} : vector<4x768xf32> to vector<4x128xf32>
    %368 = arith.addf %366, %367 : vector<4x128xf32>
    %369 = arith.negf %368 : vector<4x128xf32>
    %370 = math.exp %369 : vector<4x128xf32>
    %cst_97 = arith.constant 1.000000e+00 : f32
    %371 = vector.broadcast %cst_97 : f32 to vector<4x128xf32>
    %372 = arith.addf %371, %370 : vector<4x128xf32>
    %373 = arith.divf %371, %372 : vector<4x128xf32>
    %374 = vector.extract_strided_slice %338 {offsets = [0, 512], sizes = [4, 128], strides = [1, 1]} : vector<4x768xf32> to vector<4x128xf32>
    %375 = vector.extract_strided_slice %344 {offsets = [0, 512], sizes = [4, 128], strides = [1, 1]} : vector<4x768xf32> to vector<4x128xf32>
    %376 = arith.addf %374, %375 : vector<4x128xf32>
    %377 = arith.negf %376 : vector<4x128xf32>
    %378 = math.exp %377 : vector<4x128xf32>
    %cst_98 = arith.constant 1.000000e+00 : f32
    %379 = vector.broadcast %cst_98 : f32 to vector<4x128xf32>
    %380 = arith.addf %379, %378 : vector<4x128xf32>
    %381 = arith.divf %379, %380 : vector<4x128xf32>
    %382 = vector.extract_strided_slice %338 {offsets = [0, 640], sizes = [4, 128], strides = [1, 1]} : vector<4x768xf32> to vector<4x128xf32>
    %383 = vector.extract_strided_slice %344 {offsets = [0, 640], sizes = [4, 128], strides = [1, 1]} : vector<4x768xf32> to vector<4x128xf32>
    %384 = arith.mulf %373, %383 : vector<4x128xf32>
    %385 = arith.addf %382, %384 : vector<4x128xf32>
    %386 = math.tanh %385 : vector<4x128xf32>
    %cst_99 = arith.constant 1.000000e+00 : f32
    %387 = vector.broadcast %cst_99 : f32 to vector<4x128xf32>
    %388 = arith.subf %387, %360 : vector<4x128xf32>
    %389 = arith.mulf %388, %365 : vector<4x128xf32>
    %390 = arith.mulf %360, %333 : vector<4x128xf32>
    %391 = arith.addf %389, %390 : vector<4x128xf32>
    %cst_100 = arith.constant 1.000000e+00 : f32
    %392 = vector.broadcast %cst_100 : f32 to vector<4x128xf32>
    %393 = arith.subf %392, %381 : vector<4x128xf32>
    %394 = arith.mulf %393, %386 : vector<4x128xf32>
    %395 = arith.mulf %381, %333 : vector<4x128xf32>
    %396 = arith.addf %394, %395 : vector<4x128xf32>
    %397 = arith.select %16, %391, %396 : vector<4x128xi1>, vector<4x128xf32>
    %398 = vector.extract_strided_slice %397 {offsets = [0, 0], sizes = [2, 128], strides = [1, 1]} : vector<4x128xf32> to vector<2x128xf32>
    %c10_101 = arith.constant 10 : index
    %c0_102 = arith.constant 0 : index
    %399 = vector.load %arg14[%c10_101, %c0_102] : memref<16x128xf32, #tpu.memory_space<vmem>>, vector<2x128xf32>
    tpu.vector_store %arg14[%c10_101, %c0_102], %398 {strides = array<i32>} : memref<16x128xf32, #tpu.memory_space<vmem>>, vector<2x128xf32>,
    %400 = vector.extract_strided_slice %397 {offsets = [2, 0], sizes = [2, 128], strides = [1, 1]} : vector<4x128xf32> to vector<2x128xf32>
    %c4_103 = arith.constant 4 : index
    %c0_104 = arith.constant 0 : index
    %401 = vector.load %arg15[%c4_103, %c0_104] : memref<16x128xf32, #tpu.memory_space<vmem>>, vector<2x128xf32>
    tpu.vector_store %arg15[%c4_103, %c0_104], %400 {strides = array<i32>} : memref<16x128xf32, #tpu.memory_space<vmem>>, vector<2x128xf32>,
    %c24 = arith.constant 24 : index
    %c0_105 = arith.constant 0 : index
    %402 = vector.load %arg13[%c24, %c0_105] : memref<32x768xf32, #tpu.memory_space<vmem>>, vector<4x768xf32>
    %403 = vector.extract_strided_slice %397 {offsets = [0, 0], sizes = [4, 32], strides = [1, 1]} : vector<4x128xf32> to vector<4x32xf32>
    %c0_106 = arith.constant 0 : index
    %c0_107 = arith.constant 0 : index
    %404 = vector.load %arg4[%c0_106, %c0_107] : memref<32x768xf32, #tpu.memory_space<vmem>>, vector<32x768xf32>
    %cst_108 = arith.constant dense<0.000000e+00> : vector<4x768xf32>
    %405 = tpu.matmul %403, %404, %cst_108 {dimension_numbers = #tpu.dot_dimension_numbers<[1], [0], [0], [1], [0, 0, 1, 1], [], []>} : vector<4x32xf32>, vector<32x768xf32>, vector<4x768xf32> -> vector<4x768xf32>
    %c0_109 = arith.constant 0 : index
    %c0_110 = arith.constant 0 : index
    %406 = vector.load %arg5[%c0_109, %c0_110] : memref<1x768xf32, #tpu.memory_space<vmem>>, vector<1x768xf32>
    %407 = vector.broadcast %406 : vector<1x768xf32> to vector<4x768xf32>
    %408 = arith.addf %405, %407 : vector<4x768xf32>
    %409 = vector.extract_strided_slice %402 {offsets = [0, 0], sizes = [4, 128], strides = [1, 1]} : vector<4x768xf32> to vector<4x128xf32>
    %410 = vector.extract_strided_slice %408 {offsets = [0, 0], sizes = [4, 128], strides = [1, 1]} : vector<4x768xf32> to vector<4x128xf32>
    %411 = arith.addf %409, %410 : vector<4x128xf32>
    %412 = arith.negf %411 : vector<4x128xf32>
    %413 = math.exp %412 : vector<4x128xf32>
    %cst_111 = arith.constant 1.000000e+00 : f32
    %414 = vector.broadcast %cst_111 : f32 to vector<4x128xf32>
    %415 = arith.addf %414, %413 : vector<4x128xf32>
    %416 = arith.divf %414, %415 : vector<4x128xf32>
    %417 = vector.extract_strided_slice %402 {offsets = [0, 128], sizes = [4, 128], strides = [1, 1]} : vector<4x768xf32> to vector<4x128xf32>
    %418 = vector.extract_strided_slice %408 {offsets = [0, 128], sizes = [4, 128], strides = [1, 1]} : vector<4x768xf32> to vector<4x128xf32>
    %419 = arith.addf %417, %418 : vector<4x128xf32>
    %420 = arith.negf %419 : vector<4x128xf32>
    %421 = math.exp %420 : vector<4x128xf32>
    %cst_112 = arith.constant 1.000000e+00 : f32
    %422 = vector.broadcast %cst_112 : f32 to vector<4x128xf32>
    %423 = arith.addf %422, %421 : vector<4x128xf32>
    %424 = arith.divf %422, %423 : vector<4x128xf32>
    %425 = vector.extract_strided_slice %402 {offsets = [0, 256], sizes = [4, 128], strides = [1, 1]} : vector<4x768xf32> to vector<4x128xf32>
    %426 = vector.extract_strided_slice %408 {offsets = [0, 256], sizes = [4, 128], strides = [1, 1]} : vector<4x768xf32> to vector<4x128xf32>
    %427 = arith.mulf %416, %426 : vector<4x128xf32>
    %428 = arith.addf %425, %427 : vector<4x128xf32>
    %429 = math.tanh %428 : vector<4x128xf32>
    %430 = vector.extract_strided_slice %402 {offsets = [0, 384], sizes = [4, 128], strides = [1, 1]} : vector<4x768xf32> to vector<4x128xf32>
    %431 = vector.extract_strided_slice %408 {offsets = [0, 384], sizes = [4, 128], strides = [1, 1]} : vector<4x768xf32> to vector<4x128xf32>
    %432 = arith.addf %430, %431 : vector<4x128xf32>
    %433 = arith.negf %432 : vector<4x128xf32>
    %434 = math.exp %433 : vector<4x128xf32>
    %cst_113 = arith.constant 1.000000e+00 : f32
    %435 = vector.broadcast %cst_113 : f32 to vector<4x128xf32>
    %436 = arith.addf %435, %434 : vector<4x128xf32>
    %437 = arith.divf %435, %436 : vector<4x128xf32>
    %438 = vector.extract_strided_slice %402 {offsets = [0, 512], sizes = [4, 128], strides = [1, 1]} : vector<4x768xf32> to vector<4x128xf32>
    %439 = vector.extract_strided_slice %408 {offsets = [0, 512], sizes = [4, 128], strides = [1, 1]} : vector<4x768xf32> to vector<4x128xf32>
    %440 = arith.addf %438, %439 : vector<4x128xf32>
    %441 = arith.negf %440 : vector<4x128xf32>
    %442 = math.exp %441 : vector<4x128xf32>
    %cst_114 = arith.constant 1.000000e+00 : f32
    %443 = vector.broadcast %cst_114 : f32 to vector<4x128xf32>
    %444 = arith.addf %443, %442 : vector<4x128xf32>
    %445 = arith.divf %443, %444 : vector<4x128xf32>
    %446 = vector.extract_strided_slice %402 {offsets = [0, 640], sizes = [4, 128], strides = [1, 1]} : vector<4x768xf32> to vector<4x128xf32>
    %447 = vector.extract_strided_slice %408 {offsets = [0, 640], sizes = [4, 128], strides = [1, 1]} : vector<4x768xf32> to vector<4x128xf32>
    %448 = arith.mulf %437, %447 : vector<4x128xf32>
    %449 = arith.addf %446, %448 : vector<4x128xf32>
    %450 = math.tanh %449 : vector<4x128xf32>
    %cst_115 = arith.constant 1.000000e+00 : f32
    %451 = vector.broadcast %cst_115 : f32 to vector<4x128xf32>
    %452 = arith.subf %451, %424 : vector<4x128xf32>
    %453 = arith.mulf %452, %429 : vector<4x128xf32>
    %454 = arith.mulf %424, %397 : vector<4x128xf32>
    %455 = arith.addf %453, %454 : vector<4x128xf32>
    %cst_116 = arith.constant 1.000000e+00 : f32
    %456 = vector.broadcast %cst_116 : f32 to vector<4x128xf32>
    %457 = arith.subf %456, %445 : vector<4x128xf32>
    %458 = arith.mulf %457, %450 : vector<4x128xf32>
    %459 = arith.mulf %445, %397 : vector<4x128xf32>
    %460 = arith.addf %458, %459 : vector<4x128xf32>
    %461 = arith.select %16, %455, %460 : vector<4x128xi1>, vector<4x128xf32>
    %462 = vector.extract_strided_slice %461 {offsets = [0, 0], sizes = [2, 128], strides = [1, 1]} : vector<4x128xf32> to vector<2x128xf32>
    %c12_117 = arith.constant 12 : index
    %c0_118 = arith.constant 0 : index
    %463 = vector.load %arg14[%c12_117, %c0_118] : memref<16x128xf32, #tpu.memory_space<vmem>>, vector<2x128xf32>
    tpu.vector_store %arg14[%c12_117, %c0_118], %462 {strides = array<i32>} : memref<16x128xf32, #tpu.memory_space<vmem>>, vector<2x128xf32>,
    %464 = vector.extract_strided_slice %461 {offsets = [2, 0], sizes = [2, 128], strides = [1, 1]} : vector<4x128xf32> to vector<2x128xf32>
    %c2_119 = arith.constant 2 : index
    %c0_120 = arith.constant 0 : index
    %465 = vector.load %arg15[%c2_119, %c0_120] : memref<16x128xf32, #tpu.memory_space<vmem>>, vector<2x128xf32>
    tpu.vector_store %arg15[%c2_119, %c0_120], %464 {strides = array<i32>} : memref<16x128xf32, #tpu.memory_space<vmem>>, vector<2x128xf32>,
    %c28 = arith.constant 28 : index
    %c0_121 = arith.constant 0 : index
    %466 = vector.load %arg13[%c28, %c0_121] : memref<32x768xf32, #tpu.memory_space<vmem>>, vector<4x768xf32>
    %467 = vector.extract_strided_slice %461 {offsets = [0, 0], sizes = [4, 32], strides = [1, 1]} : vector<4x128xf32> to vector<4x32xf32>
    %c0_122 = arith.constant 0 : index
    %c0_123 = arith.constant 0 : index
    %468 = vector.load %arg4[%c0_122, %c0_123] : memref<32x768xf32, #tpu.memory_space<vmem>>, vector<32x768xf32>
    %cst_124 = arith.constant dense<0.000000e+00> : vector<4x768xf32>
    %469 = tpu.matmul %467, %468, %cst_124 {dimension_numbers = #tpu.dot_dimension_numbers<[1], [0], [0], [1], [0, 0, 1, 1], [], []>} : vector<4x32xf32>, vector<32x768xf32>, vector<4x768xf32> -> vector<4x768xf32>
    %c0_125 = arith.constant 0 : index
    %c0_126 = arith.constant 0 : index
    %470 = vector.load %arg5[%c0_125, %c0_126] : memref<1x768xf32, #tpu.memory_space<vmem>>, vector<1x768xf32>
    %471 = vector.broadcast %470 : vector<1x768xf32> to vector<4x768xf32>
    %472 = arith.addf %469, %471 : vector<4x768xf32>
    %473 = vector.extract_strided_slice %466 {offsets = [0, 0], sizes = [4, 128], strides = [1, 1]} : vector<4x768xf32> to vector<4x128xf32>
    %474 = vector.extract_strided_slice %472 {offsets = [0, 0], sizes = [4, 128], strides = [1, 1]} : vector<4x768xf32> to vector<4x128xf32>
    %475 = arith.addf %473, %474 : vector<4x128xf32>
    %476 = arith.negf %475 : vector<4x128xf32>
    %477 = math.exp %476 : vector<4x128xf32>
    %cst_127 = arith.constant 1.000000e+00 : f32
    %478 = vector.broadcast %cst_127 : f32 to vector<4x128xf32>
    %479 = arith.addf %478, %477 : vector<4x128xf32>
    %480 = arith.divf %478, %479 : vector<4x128xf32>
    %481 = vector.extract_strided_slice %466 {offsets = [0, 128], sizes = [4, 128], strides = [1, 1]} : vector<4x768xf32> to vector<4x128xf32>
    %482 = vector.extract_strided_slice %472 {offsets = [0, 128], sizes = [4, 128], strides = [1, 1]} : vector<4x768xf32> to vector<4x128xf32>
    %483 = arith.addf %481, %482 : vector<4x128xf32>
    %484 = arith.negf %483 : vector<4x128xf32>
    %485 = math.exp %484 : vector<4x128xf32>
    %cst_128 = arith.constant 1.000000e+00 : f32
    %486 = vector.broadcast %cst_128 : f32 to vector<4x128xf32>
    %487 = arith.addf %486, %485 : vector<4x128xf32>
    %488 = arith.divf %486, %487 : vector<4x128xf32>
    %489 = vector.extract_strided_slice %466 {offsets = [0, 256], sizes = [4, 128], strides = [1, 1]} : vector<4x768xf32> to vector<4x128xf32>
    %490 = vector.extract_strided_slice %472 {offsets = [0, 256], sizes = [4, 128], strides = [1, 1]} : vector<4x768xf32> to vector<4x128xf32>
    %491 = arith.mulf %480, %490 : vector<4x128xf32>
    %492 = arith.addf %489, %491 : vector<4x128xf32>
    %493 = math.tanh %492 : vector<4x128xf32>
    %494 = vector.extract_strided_slice %466 {offsets = [0, 384], sizes = [4, 128], strides = [1, 1]} : vector<4x768xf32> to vector<4x128xf32>
    %495 = vector.extract_strided_slice %472 {offsets = [0, 384], sizes = [4, 128], strides = [1, 1]} : vector<4x768xf32> to vector<4x128xf32>
    %496 = arith.addf %494, %495 : vector<4x128xf32>
    %497 = arith.negf %496 : vector<4x128xf32>
    %498 = math.exp %497 : vector<4x128xf32>
    %cst_129 = arith.constant 1.000000e+00 : f32
    %499 = vector.broadcast %cst_129 : f32 to vector<4x128xf32>
    %500 = arith.addf %499, %498 : vector<4x128xf32>
    %501 = arith.divf %499, %500 : vector<4x128xf32>
    %502 = vector.extract_strided_slice %466 {offsets = [0, 512], sizes = [4, 128], strides = [1, 1]} : vector<4x768xf32> to vector<4x128xf32>
    %503 = vector.extract_strided_slice %472 {offsets = [0, 512], sizes = [4, 128], strides = [1, 1]} : vector<4x768xf32> to vector<4x128xf32>
    %504 = arith.addf %502, %503 : vector<4x128xf32>
    %505 = arith.negf %504 : vector<4x128xf32>
    %506 = math.exp %505 : vector<4x128xf32>
    %cst_130 = arith.constant 1.000000e+00 : f32
    %507 = vector.broadcast %cst_130 : f32 to vector<4x128xf32>
    %508 = arith.addf %507, %506 : vector<4x128xf32>
    %509 = arith.divf %507, %508 : vector<4x128xf32>
    %510 = vector.extract_strided_slice %466 {offsets = [0, 640], sizes = [4, 128], strides = [1, 1]} : vector<4x768xf32> to vector<4x128xf32>
    %511 = vector.extract_strided_slice %472 {offsets = [0, 640], sizes = [4, 128], strides = [1, 1]} : vector<4x768xf32> to vector<4x128xf32>
    %512 = arith.mulf %501, %511 : vector<4x128xf32>
    %513 = arith.addf %510, %512 : vector<4x128xf32>
    %514 = math.tanh %513 : vector<4x128xf32>
    %cst_131 = arith.constant 1.000000e+00 : f32
    %515 = vector.broadcast %cst_131 : f32 to vector<4x128xf32>
    %516 = arith.subf %515, %488 : vector<4x128xf32>
    %517 = arith.mulf %516, %493 : vector<4x128xf32>
    %518 = arith.mulf %488, %461 : vector<4x128xf32>
    %519 = arith.addf %517, %518 : vector<4x128xf32>
    %cst_132 = arith.constant 1.000000e+00 : f32
    %520 = vector.broadcast %cst_132 : f32 to vector<4x128xf32>
    %521 = arith.subf %520, %509 : vector<4x128xf32>
    %522 = arith.mulf %521, %514 : vector<4x128xf32>
    %523 = arith.mulf %509, %461 : vector<4x128xf32>
    %524 = arith.addf %522, %523 : vector<4x128xf32>
    %525 = arith.select %16, %519, %524 : vector<4x128xi1>, vector<4x128xf32>
    %526 = vector.extract_strided_slice %525 {offsets = [0, 0], sizes = [2, 128], strides = [1, 1]} : vector<4x128xf32> to vector<2x128xf32>
    %c14_133 = arith.constant 14 : index
    %c0_134 = arith.constant 0 : index
    %527 = vector.load %arg14[%c14_133, %c0_134] : memref<16x128xf32, #tpu.memory_space<vmem>>, vector<2x128xf32>
    tpu.vector_store %arg14[%c14_133, %c0_134], %526 {strides = array<i32>} : memref<16x128xf32, #tpu.memory_space<vmem>>, vector<2x128xf32>,
    %528 = vector.extract_strided_slice %525 {offsets = [2, 0], sizes = [2, 128], strides = [1, 1]} : vector<4x128xf32> to vector<2x128xf32>
    %c0_135 = arith.constant 0 : index
    %c0_136 = arith.constant 0 : index
    %529 = vector.load %arg15[%c0_135, %c0_136] : memref<16x128xf32, #tpu.memory_space<vmem>>, vector<2x128xf32>
    tpu.vector_store %arg15[%c0_135, %c0_136], %528 {strides = array<i32>} : memref<16x128xf32, #tpu.memory_space<vmem>>, vector<2x128xf32>,
    %c0_137 = arith.constant 0 : index
    %c0_138 = arith.constant 0 : index
    %530 = vector.load %arg14[%c0_137, %c0_138] : memref<16x128xf32, #tpu.memory_space<vmem>>, vector<16x128xf32>
    %c0_139 = arith.constant 0 : index
    %c0_140 = arith.constant 0 : index
    %531 = vector.load %arg7[%c0_139, %c0_140] : memref<128x32xf32, #tpu.memory_space<vmem>>, vector<128x32xf32>
    %cst_141 = arith.constant dense<0.000000e+00> : vector<16x32xf32>
    %532 = tpu.matmul %530, %531, %cst_141 {dimension_numbers = #tpu.dot_dimension_numbers<[1], [0], [0], [1], [0, 0, 1, 1], [], []>} : vector<16x128xf32>, vector<128x32xf32>, vector<16x32xf32> -> vector<16x32xf32>
    %c0_142 = arith.constant 0 : index
    %c0_143 = arith.constant 0 : index
    %533 = vector.load %arg15[%c0_142, %c0_143] : memref<16x128xf32, #tpu.memory_space<vmem>>, vector<16x128xf32>
    %c0_144 = arith.constant 0 : index
    %c0_145 = arith.constant 0 : index
    %534 = vector.load %arg8[%c0_144, %c0_145] : memref<128x32xf32, #tpu.memory_space<vmem>>, vector<128x32xf32>
    %cst_146 = arith.constant dense<0.000000e+00> : vector<16x32xf32>
    %535 = tpu.matmul %533, %534, %cst_146 {dimension_numbers = #tpu.dot_dimension_numbers<[1], [0], [0], [1], [0, 0, 1, 1], [], []>} : vector<16x128xf32>, vector<128x32xf32>, vector<16x32xf32> -> vector<16x32xf32>
    %536 = arith.addf %532, %535 : vector<16x32xf32>
    %c0_147 = arith.constant 0 : index
    %c0_148 = arith.constant 0 : index
    %537 = vector.load %arg9[%c0_147, %c0_148] : memref<1x32xf32, #tpu.memory_space<vmem>>, vector<1x32xf32>
    %538 = vector.broadcast %537 : vector<1x32xf32> to vector<16x32xf32>
    %539 = arith.addf %536, %538 : vector<16x32xf32>
    %540 = math.tanh %539 : vector<16x32xf32>
    %c0_149 = arith.constant 0 : index
    %c0_150 = arith.constant 0 : index
    %541 = vector.load %arg10[%c0_149, %c0_150] : memref<32x5xf32, #tpu.memory_space<vmem>>, vector<32x5xf32>
    %cst_151 = arith.constant dense<0.000000e+00> : vector<16x5xf32>
    %542 = tpu.matmul %540, %541, %cst_151 {dimension_numbers = #tpu.dot_dimension_numbers<[1], [0], [0], [1], [0, 0, 1, 1], [], []>} : vector<16x32xf32>, vector<32x5xf32>, vector<16x5xf32> -> vector<16x5xf32>
    %c0_152 = arith.constant 0 : index
    %c0_153 = arith.constant 0 : index
    %543 = vector.load %arg11[%c0_152, %c0_153] : memref<1x5xf32, #tpu.memory_space<vmem>>, vector<1x5xf32>
    %544 = vector.broadcast %543 : vector<1x5xf32> to vector<16x5xf32>
    %545 = arith.addf %542, %544 : vector<16x5xf32>
    %c0_154 = arith.constant 0 : index
    %c0_155 = arith.constant 0 : index
    %546 = vector.load %arg12[%c0_154, %c0_155] : memref<16x5xf32, #tpu.memory_space<vmem>>, vector<16x5xf32>
    tpu.vector_store %arg12[%c0_154, %c0_155], %545 {strides = array<i32>} : memref<16x5xf32, #tpu.memory_space<vmem>>, vector<16x5xf32>,
    return
  }
}

</mosaic_0001>

<bundles_post_ra>
// kernel: custom-call.14
= control target key start
LH: loop header
LB: loop body
LE: loop exit
PB: predicated region body
PF: predicated region fallthrough
CT: control target
= control target key end

     0   :  { %s6_s0 = inlined_call_operand.vmem [shape: s32[7,2,5], index: 0, kind: output, shape index: {}]  }

// kernel: seqlabel_forward.1
= control target key start
LH: loop header
LB: loop body
LE: loop exit
PB: predicated region body
PF: predicated region fallthrough
CT: control target
= control target key end

     0   :  { %v3930_v0 = vmov 0   ;;  %v3931_v7 = vmov 0.0   ;;  %v45_v21 = vlaneseq  ;;  %vm79_vm0 = vcmask 523264   ;;  %s4946_s0 = inlined_call_operand.vmem [shape: s32[32,1], index: 0, kind: input, shape index: {}]   ;;  %s4947_s1 = inlined_call_operand.vmem [shape: f32[64,32], index: 1, kind: input, shape index: {}]   ;;  %s4948_s2 = inlined_call_operand.vmem [shape: f32[32,768], index: 2, kind: input, shape index: {}]   ;;  %s4949_s4 = inlined_call_operand.vmem [shape: f32[32,768], index: 4, kind: input, shape index: {}]   ;;  %s4950_s6 = inlined_call_operand.vmem [shape: f32[4,128], index: 6, kind: input, shape index: {}]   ;;  %s4951_s3 = inlined_call_operand.vmem [shape: f32[1,768], index: 3, kind: input, shape index: {}]   ;;  %s4952_s5 = inlined_call_operand.vmem [shape: f32[1,768], index: 5, kind: input, shape index: {}]   ;;  %s4953_s7 = inlined_call_operand.vmem [shape: f32[128,32], index: 7, kind: input, shape index: {}]   ;;  %s4954_s8 = inlined_call_operand.vmem [shape: f32[128,32], index: 8, kind: input, shape index: {}]   ;;  %s4955_s10 = inlined_call_operand.vmem [shape: f32[32,5], index: 10, kind: input, shape index: {}]   ;;  %s4956_s9 = inlined_call_operand.vmem [shape: f32[1,32], index: 9, kind: input, shape index: {}]   ;;  %s4957_s11 = inlined_call_operand.vmem [shape: f32[1,5], index: 11, kind: input, shape index: {}]   ;;  %s4958_s12 = inlined_call_operand.vmem [shape: f32[16,5], index: 12, kind: output, shape index: {}]  }
   0x1   :  { %3764 = vset.pattern.permute.xlu0 %v3930_v0  ;;  %v41_v1 = vld [vmem:[%s4946_s0] sm:$0xff]  ;;  %3765 = vset.pattern.permute.xlu1 %v3930_v0  ;;  %v43_v2 = vld [vmem:[%s4946_s0 + $0x10] sm:$0xff]  ;;  %v78_v3 = vld [vmem:[%s4947_s1 + $0x38] sm:$0xff]  ;;  %vm233_vm5 = vcmask 261120   ;;  %vm3518_vm7 = vcmask 39936  }
   0x2   :  { %48 = vperm.xlu0 %3764, %v41_v1   ;;  %54 = vperm.xlu1 %3765, %v43_v2   ;;  %v77_v4 = vld [vmem:[%s4947_s1 + $0x30] sm:$0xff]  ;;  %v42_v5 = vld [vmem:[%s4946_s0 + $0x8] sm:$0xff]  ;;  %v44_v6 = vld [vmem:[%s4946_s0 + $0x18] sm:$0xff]  ;;  %v46_v22 = vand.u32 127, %v45_v21 }
   0x3   :  { %3659 = vmatprep.subr.mxu0 %v78_v3  ;;  %310 = vmatprep.mubr.f32.mxu1 %v3931_v7  ;;  %v76_v8 = vld [vmem:[%s4947_s1 + $0x28] sm:$0xff]  ;;  %v75_v9 = vld [vmem:[%s4947_s1 + $0x20] sm:$0xff]  ;;  %v74_v10 = vld [vmem:[%s4947_s1 + $0x18] sm:$0xff] }
   0x4   :  { %3660 = vmatpush3.msra.mxu0 %v78_v3  ;;  %v196_v11 = vld [vmem:[%s4948_s2 + $0x98] sm:$0xff]  ;;  %v195_v12 = vld [vmem:[%s4948_s2 + $0x90] sm:$0xff]  ;;  %v190_v13 = vld [vmem:[%s4948_s2 + $0x68] sm:$0xff] }
   0x5   :  { %3661 = vmatprep.subr.mxu0 %v77_v4  ;;  %270 = vmatprep.subr.mxu1 %v196_v11  ;;  %v189_v14 = vld [vmem:[%s4948_s2 + $0x60] sm:$0xff]  ;;  %v73_v15 = vld [vmem:[%s4947_s1 + $0x10] sm:$0xff]  ;;  %v184_v16 = vld [vmem:[%s4948_s2 + $0x38] sm:$0xff] }
   0x6   :  { %51 = vperm.xlu0 %3764, %v42_v5   ;;  %57 = vperm.xlu1 %3765, %v44_v6   ;;  %v183_v17 = vld [vmem:[%s4948_s2 + $0x30] sm:$0xff]  ;;  %v72_v18 = vld [vmem:[%s4947_s1 + $0x8] sm:$0xff]  ;;  %v71_v19 = vld [vmem:[%s4947_s1] sm:$0xff] }
   0x7   :  { %3662 = vmatpush3.msra.mxu0 %v77_v4  ;;  %271 = vmatpush1.msra.mxu1 %v195_v12  ;;  %v198_v20 = vld [vmem:[%s4948_s2 + $0xa8] sm:$0xff]  ;;  %v197_v29 = vld [vmem:[%s4948_s2 + $0xa0] sm:$0xff]  ;;  %v192_v31 = vld [vmem:[%s4948_s2 + $0x78] sm:$0xff] }
   0x8   :  { %3663 = vmatprep.subr.mxu0 %v76_v8  ;;  %272 = vmatprep.subr.mxu1 %v190_v13  ;;  %v191_v32 = vld [vmem:[%s4948_s2 + $0x70] sm:$0xff]  ;;  %v186_v34 = vld [vmem:[%s4948_s2 + $0x48] sm:$0xff]  ;;  %v185_v35 = vld [vmem:[%s4948_s2 + $0x40] sm:$0xff] }
   0x9   :  { %3664 = vmatpush3.msra.mxu0 %v76_v8  ;;  %273 = vmatpush1.msra.mxu1 %v189_v14  ;;  %v178_v36 = vld [vmem:[%s4948_s2 + $0x8] sm:$0xff]  ;;  %v177_v37 = vld [vmem:[%s4948_s2] sm:$0xff]  ;;  %v180_v38 = vld [vmem:[%s4948_s2 + $0x18] sm:$0xff]  ;;  %v4327_v14 = vshrl.u32 %v45_v21, 7 }
   0xa   :  { %3665 = vmatprep.subr.mxu0 %v75_v9  ;;  %274 = vmatprep.subr.mxu1 %v184_v16  ;;  %v179_v39 = vld [vmem:[%s4948_s2 + $0x10] sm:$0xff]  ;;  %v200_v40 = vld [vmem:[%s4948_s2 + $0xb8] sm:$0xff]  ;;  %v194_v45 = vld [vmem:[%s4948_s2 + $0x88] sm:$0xff] }
   0xb   :  { %3666 = vmatpush3.msra.mxu0 %v75_v9  ;;  %275 = vmatpush1.msra.mxu1 %v183_v17  ;;  %v4098_v41 = vld [vmem:[%s4949_s4 + $0x98] sm:$0xff]  ;;  %v199_v43 = vld [vmem:[%s4948_s2 + $0xb0] sm:$0xff]  ;;  %v193_v46 = vld [vmem:[%s4948_s2 + $0x80] sm:$0xff]  ;;  %v4333_v16 = vsub.s32 2, %v4327_v14  ;;  %vm539_vm6 = vcmp.lt.s32.totalorder %v4327_v14, 2 }
   0xc   :  { %3667 = vmatprep.subr.mxu0 %v74_v10  ;;  %276 = vmatprep.subr.mxu1 %v178_v36  ;;  %v4117_v47 = vld [vmem:[%s4949_s4 + $0x90] sm:$0xff]  ;;  %v188_v49 = vld [vmem:[%s4948_s2 + $0x58] sm:$0xff]  ;;  %v4130_v50 = vld [vmem:[%s4949_s4 + $0x68] sm:$0xff] }
   0xd   :  { %3668 = vmatpush3.msra.mxu0 %v74_v10  ;;  %277 = vmatpush1.msra.mxu1 %v177_v37  ;;  %v187_v51 = vld [vmem:[%s4948_s2 + $0x50] sm:$0xff]  ;;  %v4142_v52 = vld [vmem:[%s4949_s4 + $0x60] sm:$0xff]  ;;  %v182_v54 = vld [vmem:[%s4948_s2 + $0x28] sm:$0xff] }
   0xe   :  { %3669 = vmatprep.subr.mxu0 %v73_v15  ;;  %448 = vmatprep.subr.mxu1 %v200_v40  ;;  %v4154_v55 = vld [vmem:[%s4949_s4 + $0x38] sm:$0xff]  ;;  %v181_v56 = vld [vmem:[%s4948_s2 + $0x20] sm:$0xff]  ;;  %v4164_v57 = vld [vmem:[%s4949_s4 + $0x30] sm:$0xff] }
   0xf   :  { %3670 = vmatpush3.msra.mxu0 %v73_v15  ;;  %v4172_v58 = vld [vmem:[%s4949_s4 + $0x8] sm:$0xff]  ;;  %v4178_v59 = vld [vmem:[%s4949_s4] sm:$0xff]  ;;  %v4192_v61 = vld [vmem:[%s4949_s4 + $0xb8] sm:$0xff]  ;;  %v4330_v15 = vsub.s32 0, %v4327_v14 }
  0x10   :  { %3671 = vmatprep.subr.mxu0 %v72_v18  ;;  %v4187_v60 = vld [vmem:[%s4949_s4 + $0xa8] sm:$0xff]  ;;  %v4199_v62 = vld [vmem:[%s4950_s6] sm:$0xf]  ;;  %v4211_v0 = vld [vmem:[%s4949_s4 + $0xb0] sm:$0xff] }
  0x11   :  { %3672 = vmatpush3.msra.mxu0 %v72_v18  ;;  %v4206_v63 = vld [vmem:[%s4949_s4 + $0xa0] sm:$0xff]  ;;  %v4218_v1 = vld [vmem:[%s4949_s4 + $0x88] sm:$0xff]  ;;  %v4226_v2 = vld [vmem:[%s4949_s4 + $0x78] sm:$0xff]  ;;  %v4339_v18 = vsub.s32 1, %v4327_v14 }
  0x12   :  { %3673 = vmatprep.subr.mxu0 %v71_v19  ;;  %v4231_v3 = vld [vmem:[%s4949_s4 + $0x80] sm:$0xff]  ;;  %v4238_v4 = vld [vmem:[%s4949_s4 + $0x58] sm:$0xff]  ;;  %v4245_v5 = vld [vmem:[%s4949_s4 + $0x70] sm:$0xff] }
  0x13   :  { %3674 = vmatpush3.msra.mxu0 %v71_v19  ;;  %v4250_v6 = vld [vmem:[%s4949_s4 + $0x50] sm:$0xff]  ;;  %v4257_v8 = vld [vmem:[%s4949_s4 + $0x28] sm:$0xff]  ;;  %v4270_v10 = vld [vmem:[%s4949_s4 + $0x20] sm:$0xff]  ;;  %v4342_v19 = vsub.s32 3, %v4327_v14 }
  0x14   :  { %359 = vmatprep.subr.mxu0 %v198_v20  ;;  %v4265_v9 = vld [vmem:[%s4949_s4 + $0x48] sm:$0xff]  ;;  %v4279_v11 = vld [vmem:[%s4949_s4 + $0x40] sm:$0xff]  ;;  %v4286_v12 = vld [vmem:[%s4949_s4 + $0x18] sm:$0xff] }
  0x15   :  { %v4293_v13 = vld [vmem:[%s4949_s4 + $0x10] sm:$0xff]  ;;  %v201_v17 = vld [vmem:[%s4951_s3] sm:$0x3f] }
  0x16   :  { %v206_v20 = vrot.slane %v201_v17, %v4330_v15  ;;  %v214_v21 = vrot.slane %v201_v17, %v4333_v16 }
  0x7d   :  { %v49_v23 = vpop.permute.xlu0 %48  ;;  %v55_v24 = vpop.permute.xlu1 %54 }
  0x7e   :  { %vm59_vm1 = vcmp.eq.s32.totalorder %v46_v22, %v49_v23  ;;  %vm61_vm2 = vcmp.eq.s32.totalorder %v46_v22, %v55_v24  ;;  %v218_v23 = vrot.slane %v201_v17, %v4342_v19 }
  0x7f   :  { %v3525_v25 = vsel %vm59_vm1, 1.0, %v3931_v7  ;;  %v3527_v28 = vsel %vm61_vm2, 1.0, %v3931_v7 }
  0x80   :  { %3675 = vmatprep.mubr.msk.f32.mxu0 %vm79_vm0, %v3525_v25 }
  0x81   :  { %v52_v26 = vpop.permute.xlu0 %51  ;;  %v58_v27 = vpop.permute.xlu1 %57 }
  0x82   :  { %vm60_vm3 = vcmp.eq.s32.totalorder %v46_v22, %v52_v26  ;;  %vm62_vm4 = vcmp.eq.s32.totalorder %v46_v22, %v58_v27  ;;  %v210_v22 = vrot.slane %v201_v17, %v4339_v18 }
  0x83   :  { %v3526_v30 = vsel %vm60_vm3, 1.0, %v3931_v7  ;;  %v3528_v33 = vsel %vm62_vm4, 1.0, %v3931_v7 }
  0x84   :  { %3676 = vmatmul.mubr.msk.f32.vlgmr.msra.gmra.mxu0 %vm79_vm0, %v3526_v30 }
  0x85   :  { %3678 = vmatprep.mubr.msk.f32.mxu0 %vm79_vm0, %v3527_v28  ;;  %360 = vmatpush1.msra.mxu0 %v197_v29 }
  0x86   :  { %361 = vmatprep.subr.mxu0 %v192_v31 }
  0x87   :  { %362 = vmatpush1.msra.mxu0 %v191_v32 }
  0x88   :  { %3679 = vmatmul.mubr.msk.f32.gmra.mxu0 %vm79_vm0, %v3528_v33  ;;  %363 = vmatprep.subr.mxu0 %v186_v34 }
  0x89   :  { %399 = vmatprep.mubr.f32.mxu0 %v3931_v7  ;;  %364 = vmatpush1.msra.mxu0 %v185_v35 }
  0x8a   :  { %365 = vmatprep.subr.mxu0 %v180_v38 }
  0x8b   :  { %366 = vmatpush1.msra.mxu0 %v179_v39 }
  0x8c   :  { %630 = vmatprep.subr.mxu0 %v4098_v41 }
 0x144   :  { %v4101_v42 = vpop.f32.mrf.mxu0 }
 0x146   :  { %v158_v44 = vpop.f32.mrf.mxu0 }
 0x147   :  { %3533 = vmatmul.mubr.msk.f32.vlgmr.msra.gmra.mxu1 %vm233_vm5, %v158_v44  ;;  %3537 = vmatmul.mubr.msk.f32.vlgmr.msra.gmra.mxu0 %vm233_vm5, %v158_v44 }
 0x148   :  { %449 = vmatpush1.msra.mxu1 %v199_v43  ;;  %316 = vmatprep.mubr.f32.mxu1 %v3931_v7  ;;  %v4121_v48 = vpop.f32.mrf.mxu0 }
 0x149   :  { %405 = vmatprep.mubr.f32.mxu0 %v3931_v7  ;;  %450 = vmatprep.subr.mxu1 %v194_v45  ;;  %v4349_v45 = vsub.s32 4, %v4327_v14 }
 0x14a   :  { %451 = vmatpush1.msra.mxu1 %v193_v46  ;;  %631 = vmatpush1.msra.mxu0 %v4117_v47  ;;  %v168_v53 = vpop.f32.mrf.mxu0 }
 0x14b   :  { %3534 = vmatmul.mubr.msk.f32.gmra.mxu1 %vm233_vm5, %v4101_v42  ;;  %3538 = vmatmul.mubr.msk.f32.gmra.mxu0 %vm233_vm5, %v4101_v42 }
 0x14c   :  { %322 = vmatprep.mubr.f32.mxu1 %v3931_v7  ;;  %411 = vmatprep.mubr.f32.mxu0 %v3931_v7 }
 0x14d   :  { %452 = vmatprep.subr.mxu1 %v188_v49  ;;  %632 = vmatprep.subr.mxu0 %v4130_v50  ;;  %v4354_v49 = vld [vmem:[%s4952_s5] sm:$0x3f] }
 0x14e   :  { %453 = vmatpush1.msra.mxu1 %v187_v51  ;;  %633 = vmatpush1.msra.mxu0 %v4142_v52 }
 0x14f   :  { %3535 = vmatmul.mubr.msk.f32.gmra.mxu1 %vm233_vm5, %v168_v53  ;;  %3539 = vmatmul.mubr.msk.f32.gmra.mxu0 %vm233_vm5, %v168_v53 }
 0x150   :  { %328 = vmatprep.mubr.f32.mxu1 %v3931_v7  ;;  %417 = vmatprep.mubr.f32.mxu0 %v3931_v7 }
 0x151   :  { %454 = vmatprep.subr.mxu1 %v182_v54  ;;  %634 = vmatprep.subr.mxu0 %v4154_v55  ;;  %v4357_v54 = vsub.s32 5, %v4327_v14  ;;  %v3427_v14 = vld [vmem:[%s4955_s10 + $0x8] sm:$0xff] }
 0x152   :  { %455 = vmatpush1.msra.mxu1 %v181_v56  ;;  %635 = vmatpush1.msra.mxu0 %v4164_v57 }
 0x153   :  { %3536 = vmatmul.mubr.msk.f32.gmra.mxu1 %vm233_vm5, %v4121_v48  ;;  %3540 = vmatmul.mubr.msk.f32.gmra.mxu0 %vm233_vm5, %v4121_v48 }
 0x154   :  { %636 = vmatprep.subr.mxu0 %v4172_v58  ;;  %488 = vmatprep.mubr.f32.mxu1 %v3931_v7 }
 0x155   :  { %637 = vmatpush1.msra.mxu0 %v4178_v59  ;;  %670 = vmatprep.mubr.f32.mxu0 %v3931_v7 }
 0x156   :  { %701 = vmatprep.subr.mxu1 %v4187_v60  ;;  %772 = vmatprep.subr.mxu0 %v4192_v61 }
 0x157   :  { %3541 = vmatmul.mubr.msk.f32.vlgmr.msra.gmra.mxu1 %vm233_vm5, %v158_v44  ;;  %3545 = vmatmul.mubr.msk.f32.vlgmr.msra.gmra.mxu0 %vm233_vm5, %v4199_v62 }
 0x158   :  { %702 = vmatpush1.msra.mxu1 %v4206_v63  ;;  %773 = vmatpush1.msra.mxu0 %v4211_v0 }
 0x159   :  { %774 = vmatprep.subr.mxu0 %v4218_v1  ;;  %494 = vmatprep.mubr.f32.mxu1 %v3931_v7 }
 0x15a   :  { %703 = vmatprep.subr.mxu1 %v4226_v2  ;;  %775 = vmatpush1.msra.mxu0 %v4231_v3 }
 0x15b   :  { %3542 = vmatmul.mubr.msk.f32.gmra.mxu1 %vm233_vm5, %v4101_v42  ;;  %776 = vmatprep.subr.mxu0 %v4238_v4 }
 0x15c   :  { %704 = vmatpush1.msra.mxu1 %v4245_v5  ;;  %777 = vmatpush1.msra.mxu0 %v4250_v6 }
 0x15d   :  { %778 = vmatprep.subr.mxu0 %v4257_v8  ;;  %500 = vmatprep.mubr.f32.mxu1 %v3931_v7 }
 0x15e   :  { %705 = vmatprep.subr.mxu1 %v4265_v9  ;;  %779 = vmatpush1.msra.mxu0 %v4270_v10 }
 0x15f   :  { %812 = vmatprep.mubr.f32.mxu0 %v3931_v7  ;;  %3543 = vmatmul.mubr.msk.f32.gmra.mxu1 %vm233_vm5, %v168_v53 }
 0x160   :  { %706 = vmatpush1.msra.mxu1 %v4279_v11  ;;  %3547 = vmatmul.mubr.msk.f32.vlgmr.msra.gmra.mxu0 %vm233_vm5, %v4199_v62 }
 0x161   :  { %506 = vmatprep.mubr.f32.mxu1 %v3931_v7  ;;  %707 = vmatprep.subr.mxu1 %v4286_v12 }
 0x162   :  { %708 = vmatpush1.msra.mxu1 %v4293_v13  ;;  %1024 = vmatprep.subr.mxu0 %v4187_v60 }
 0x163   :  { %3544 = vmatmul.mubr.msk.f32.gmra.mxu1 %vm233_vm5, %v4121_v48  ;;  %953 = vmatprep.subr.mxu1 %v4098_v41 }
 0x164   :  { %741 = vmatprep.mubr.f32.mxu1 %v3931_v7  ;;  %1025 = vmatpush1.msra.mxu0 %v4206_v63 }
 0x165   :  { %1026 = vmatprep.subr.mxu0 %v4226_v2  ;;  %1064 = vmatprep.mubr.f32.mxu0 %v3931_v7 }
 0x166   :  { %1027 = vmatpush1.msra.mxu0 %v4245_v5 }
 0x167   :  { %3546 = vmatmul.mubr.msk.f32.vlgmr.msra.gmra.mxu1 %vm233_vm5, %v4199_v62  ;;  %1028 = vmatprep.subr.mxu0 %v4265_v9 }
 0x168   :  { %954 = vmatpush1.msra.mxu1 %v4117_v47  ;;  %1029 = vmatpush1.msra.mxu0 %v4279_v11 }
 0x169   :  { %955 = vmatprep.subr.mxu1 %v4130_v50  ;;  %1030 = vmatprep.subr.mxu0 %v4286_v12 }
 0x16a   :  { %956 = vmatpush1.msra.mxu1 %v4142_v52  ;;  %993 = vmatprep.mubr.f32.mxu1 %v3931_v7 }
 0x16b   :  { %957 = vmatprep.subr.mxu1 %v4154_v55  ;;  %1031 = vmatpush1.msra.mxu0 %v4293_v13 }
 0x16c   :  { %958 = vmatpush1.msra.mxu1 %v4164_v57  ;;  %1302 = vmatprep.subr.mxu0 %v4098_v41 }
 0x16d   :  { %959 = vmatprep.subr.mxu1 %v4172_v58 }
 0x16e   :  { %960 = vmatpush1.msra.mxu1 %v4178_v59 }
 0x16f   :  { %1095 = vmatprep.subr.mxu1 %v4192_v61 }
 0x207   :  { %v312_v24 = vpop.f32.mrf.mxu1  ;;  %v401_v25 = vpop.f32.mrf.mxu0 }
 0x208   :  { %v313_v26 = vadd.f32 %v312_v24, %v206_v20  ;;  %v402_v27 = vadd.f32 %v401_v25, %v214_v21 }
 0x209   :  { %v314_v28 = vpop.f32.mrf.mxu1  ;;  %v403_v29 = vpop.f32.mrf.mxu0 }
 0x20a   :  { %513 = vst [vmem:[#allocation2 + $0xb0] sm:$0xff] %v313_v26  ;;  %515 = vst [vmem:[#allocation2 + $0x10] sm:$0xff] %v402_v27  ;;  %v315_v30 = vadd.f32 %v314_v28, %v210_v22  ;;  %v404_v31 = vadd.f32 %v403_v29, %v218_v23  ;;  %v222_v27 = vrot.slane %v201_v17, %v4349_v45 }
 0x20b   :  { %v318_v32 = vpop.f32.mrf.mxu1  ;;  %v407_v33 = vpop.f32.mrf.mxu0  ;;  %v576_v28 = vrot.slane %v4354_v49, %v4330_v15 }
 0x20c   :  { %514 = vst [vmem:[#allocation2] sm:$0xff] %v315_v30  ;;  %516 = vst [vmem:[#allocation2 + $0x48] sm:$0xff] %v404_v31  ;;  %v319_v34 = vadd.f32 %v318_v32, %v206_v20  ;;  %v408_v35 = vadd.f32 %v407_v33, %v214_v21  ;;  %v226_v33 = vrot.slane %v201_v17, %v4357_v54 }
 0x20d   :  { %v320_v36 = vpop.f32.mrf.mxu1  ;;  %v409_v37 = vpop.f32.mrf.mxu0 }
 0x20e   :  { %519 = vst [vmem:[#allocation2 + $0x40] sm:$0xff] %v319_v34  ;;  %521 = vst [vmem:[#allocation2 + $0x88] sm:$0xff] %v408_v35  ;;  %v321_v38 = vadd.f32 %v320_v36, %v210_v22  ;;  %v410_v39 = vadd.f32 %v409_v37, %v218_v23 }
 0x20f   :  { %v324_v40 = vpop.f32.mrf.mxu1  ;;  %v413_v42 = vpop.f32.mrf.mxu0 }
 0x210   :  { %520 = vst [vmem:[#allocation2 + $0x78] sm:$0xff] %v321_v38  ;;  %522 = vst [vmem:[#allocation2 + $0x90] sm:$0xff] %v410_v39  ;;  %v325_v43 = vadd.f32 %v324_v40, %v206_v20  ;;  %v414_v44 = vadd.f32 %v413_v42, %v214_v21 }
 0x211   :  { %v326_v46 = vpop.f32.mrf.mxu1  ;;  %v415_v48 = vpop.f32.mrf.mxu0  ;;  %v541_v37 = vld [vmem:[#allocation2 + $0xb0] sm:$0xf] }
 0x212   :  { %525 = vst [vmem:[#allocation2 + $0x38] sm:$0xff] %v325_v43  ;;  %527 = vst [vmem:[#allocation2 + $0x70] sm:$0xff] %v414_v44  ;;  %v327_v51 = vadd.f32 %v326_v46, %v210_v22  ;;  %v416_v53 = vadd.f32 %v415_v48, %v218_v23 }
 0x213   :  { %v330_v56 = vpop.f32.mrf.mxu1  ;;  %v419_v24 = vpop.f32.mrf.mxu0 }
 0x214   :  { %526 = vst [vmem:[#allocation2 + $0x50] sm:$0xff] %v327_v51  ;;  %528 = vst [vmem:[#allocation2 + $0xa0] sm:$0xff] %v416_v53  ;;  %v331_v25 = vadd.f32 %v330_v56, %v206_v20  ;;  %v420_v26 = vadd.f32 %v419_v24, %v214_v21 }
 0x215   :  { %v332_v29 = vpop.f32.mrf.mxu1  ;;  %v421_v30 = vpop.f32.mrf.mxu0 }
 0x216   :  { %531 = vst [vmem:[#allocation2 + $0x30] sm:$0xff] %v331_v25  ;;  %533 = vst [vmem:[#allocation2 + $0x80] sm:$0xff] %v420_v26  ;;  %v333_v31 = vadd.f32 %v332_v29, %v210_v22  ;;  %v422_v32 = vadd.f32 %v421_v30, %v218_v23  ;;  %v588_v25 = vrot.slane %v4354_v49, %v4342_v19 }
 0x217   :  { %v490_v34 = vpop.f32.mrf.mxu1  ;;  %v672_v35 = vpop.f32.mrf.mxu0 }
 0x218   :  { %532 = vst [vmem:[#allocation2 + $0x58] sm:$0xff] %v333_v31  ;;  %534 = vst [vmem:[#allocation2 + $0xb8] sm:$0xff] %v422_v32  ;;  %v491_v36 = vadd.f32 %v490_v34, %v222_v27  ;;  %v673_v20 = vadd.f32 %v672_v35, %v576_v28  ;;  %v580_v28 = vrot.slane %v4354_v49, %v4339_v18  ;;  %v544_v35 = vld [vmem:[#allocation2 + $0x48] sm:$0xf] }
 0x219   :  { %v492_v21 = vpop.f32.mrf.mxu1  ;;  %v674_v29 = vpop.f32.mrf.mxu0  ;;  %v592_v31 = vrot.slane %v4354_v49, %v4349_v45 }
 0x21a   :  { %517 = vst [vmem:[#allocation2 + $0x60] sm:$0xff] %v491_v36  ;;  %v493_v38 = vadd.f32 %v492_v21, %v226_v33  ;;  %v819_v39 = vadd.f32 %v673_v20, %v541_v37  ;;  %v675_v36 = vadd.f32 %v674_v29, %v580_v28  ;;  %v543_v29 = vld [vmem:[#allocation2 + $0x10] sm:$0xf] }
 0x21b   :  { %v496_v40 = vpop.f32.mrf.mxu1 }
 0x21c   :  { %518 = vst [vmem:[#allocation2 + $0x28] sm:$0xff] %v493_v38  ;;  %v497_v42 = vadd.f32 %v496_v40, %v222_v27  ;;  %v3548_v23 = vmul.f32 -1.442695, %v819_v39  ;;  %v542_v38 = vld [vmem:[#allocation2] sm:$0xf] }
 0x21d   :  { %v498_v43 = vpop.f32.mrf.mxu1  ;;  %v826_v39 = vadd.f32 %v675_v36, %v542_v38 }
 0x21e   :  { %523 = vst [vmem:[#allocation2 + $0x18] sm:$0xff] %v497_v42  ;;  %v499_v22 = vadd.f32 %v498_v43, %v226_v33  ;;  %3766 = vpow2.f32 %v3548_v23 }
 0x21f   :  { %v502_v44 = vpop.f32.mrf.mxu1  ;;  %v3549_v43 = vmul.f32 -1.442695, %v826_v39 }
 0x220   :  { %524 = vst [vmem:[#allocation2 + $0x98] sm:$0xff] %v499_v22  ;;  %v503_v17 = vadd.f32 %v502_v44, %v222_v27  ;;  %v814_v34 = vpop.f32.mrf.mxu0 }
 0x221   :  { %v504_v46 = vpop.f32.mrf.mxu1  ;;  %v815_v20 = vadd.f32 %v814_v34, %v592_v31  ;;  %v545_v21 = vld [vmem:[#allocation2 + $0x60] sm:$0xf] }
 0x222   :  { %529 = vst [vmem:[#allocation2 + $0xa8] sm:$0xff] %v503_v17  ;;  %v505_v48 = vadd.f32 %v504_v46, %v226_v33  ;;  %v584_v17 = vrot.slane %v4354_v49, %v4333_v16 }
 0x223   :  { %v508_v51 = vpop.f32.mrf.mxu1  ;;  %v843_v40 = vadd.f32 %v815_v20, %v545_v21 }
 0x224   :  { %530 = vst [vmem:[#allocation2 + $0x68] sm:$0xff] %v505_v48  ;;  %v509_v53 = vadd.f32 %v508_v51, %v222_v27 }
 0x225   :  { %v510_v56 = vpop.f32.mrf.mxu1  ;;  %v3551_v22 = vmul.f32 -1.442695, %v843_v40 }
 0x226   :  { %535 = vst [vmem:[#allocation2 + $0x20] sm:$0xff] %v509_v53  ;;  %v511_v24 = vadd.f32 %v510_v56, %v226_v33 }
 0x227   :  { %v743_v26 = vpop.f32.mrf.mxu1 }
 0x228   :  { %536 = vst [vmem:[#allocation2 + $0x8] sm:$0xff] %v511_v24  ;;  %v744_v48 = vadd.f32 %v743_v26, %v584_v17 }
 0x229   :  { %v745_v30 = vpop.f32.mrf.mxu1 }
 0x22a   :  { %v746_v32 = vadd.f32 %v745_v30, %v588_v25  ;;  %v596_v25 = vrot.slane %v4354_v49, %v4357_v54  ;;  %v816_v30 = vpop.f32.mrf.mxu0 }
 0x22b   :  { %v3767_v37 = vpop.eup %3766 }
 0x22c   :  { %v836_v27 = vadd.f32 %v746_v32, %v544_v35  ;;  %v823_v42 = vadd.f32 1.0, %v3767_v37  ;;  %v817_v32 = vadd.f32 %v816_v30, %v596_v25  ;;  %v864_v30 = vld [vmem:[#allocation2 + $0xb0] sm:$0xf0] }
 0x22e   :  { %v3550_v33 = vmul.f32 -1.442695, %v836_v27  ;;  %v546_v27 = vld [vmem:[#allocation2 + $0x28] sm:$0xf] }
 0x230   :  { %3768 = vpow2.f32 %v3550_v33 }
 0x231   :  { %3770 = vrcp.f32 %v823_v42 }
 0x232   :  { %3772 = vpow2.f32 %v3549_v43 }
 0x233   :  { %3774 = vpow2.f32 %v3551_v22 }
 0x23d   :  { %v3769_v23 = vpop.eup %3768 }
 0x23e   :  { %v840_v44 = vadd.f32 1.0, %v3769_v23  ;;  %v3771_v46 = vpop.eup %3770 }
 0x23f   :  { %v3773_v51 = vpop.eup %3772  ;;  %v833_v56 = vmul.f32 %v3771_v46, %v744_v48 }
 0x240   :  { %3776 = vrcp.f32 %v840_v44  ;;  %v3775_v53 = vpop.eup %3774  ;;  %v830_v24 = vadd.f32 1.0, %v3773_v51 }
 0x241   :  { %v847_v28 = vadd.f32 1.0, %v3775_v53  ;;  %v834_v31 = vadd.f32 %v833_v56, %v543_v29 }
 0x242   :  { %3778 = vrcp.f32 %v830_v24 }
 0x243   :  { %3780 = vrcp.f32 %v847_v28 }
 0x244   :  { %3782 = vtanh.f32 %v834_v31 }
 0x24d   :  { %v3777_v34 = vpop.eup %3776 }
 0x24e   :  { %v850_v35 = vmul.f32 %v3777_v34, %v817_v32  ;;  %v867_v34 = vld [vmem:[#allocation2 + $0x48] sm:$0xf0] }
 0x24f   :  { %v3779_v26 = vpop.eup %3778 }
 0x250   :  { %v851_v36 = vadd.f32 %v850_v35, %v546_v27  ;;  %v3781_v20 = vpop.eup %3780  ;;  %v853_v21 = vsub.f32 1.0, %v3779_v26  ;;  %v855_v39 = vmul.f32 %v3779_v26, %v4199_v62 }
 0x251   :  { %v3783_v33 = vpop.eup %3782  ;;  %v857_v38 = vsub.f32 1.0, %v3781_v20  ;;  %v859_v42 = vmul.f32 %v3781_v20, %v4199_v62  ;;  %v894_v62 = vld [vmem:[%s4952_s5] sm:$0x3f] }
 0x252   :  { %3784 = vtanh.f32 %v851_v36  ;;  %v854_v37 = vmul.f32 %v3783_v33, %v853_v21  ;;  %v899_v44 = vrot.slane %v894_v62, %v4330_v15  ;;  %v903_v17 = vrot.slane %v894_v62, %v4339_v18  ;;  %v865_v21 = vld [vmem:[#allocation2] sm:$0xf0] }
 0x253   :  { %v911_v46 = vrot.slane %v894_v62, %v4342_v19  ;;  %v915_v32 = vrot.slane %v894_v62, %v4349_v45 }
 0x254   :  { %v856_v43 = vadd.f32 %v855_v39, %v854_v37 }
 0x25f   :  { %v3785_v49 = vpop.eup %3784 }
 0x260   :  { %v858_v40 = vmul.f32 %v3785_v49, %v857_v38  ;;  %v868_v49 = vld [vmem:[#allocation2 + $0x60] sm:$0xf0] }
 0x262   :  { %v860_v22 = vadd.f32 %v859_v42, %v858_v40 }
 0x264   :  { %v4378_v23 = vsel %vm539_vm6, %v856_v43, %v860_v22 }
 0x265   :  { %862 = vst [vmem:[#allocation3] sm:$0x3] %v4378_v23  ;;  %863 = vst [vmem:[#allocation4 + $0xc] sm:$0xc] %v4378_v23  ;;  %3552 = vmatmul.mubr.msk.f32.vlgmr.msra.gmra.mxu1 %vm233_vm5, %v4378_v23  ;;  %3553 = vmatmul.mubr.msk.f32.vlgmr.msra.gmra.mxu0 %vm233_vm5, %v4378_v23 }
 0x266   :  { %1096 = vmatpush1.msra.mxu1 %v4211_v0  ;;  %1135 = vmatprep.mubr.f32.mxu1 %v3931_v7 }
 0x267   :  { %1097 = vmatprep.subr.mxu1 %v4218_v1  ;;  %1303 = vmatpush1.msra.mxu0 %v4117_v47 }
 0x268   :  { %1098 = vmatpush1.msra.mxu1 %v4231_v3  ;;  %1304 = vmatprep.subr.mxu0 %v4130_v50 }
 0x269   :  { %1099 = vmatprep.subr.mxu1 %v4238_v4  ;;  %1305 = vmatpush1.msra.mxu0 %v4142_v52 }
 0x26a   :  { %1100 = vmatpush1.msra.mxu1 %v4250_v6  ;;  %1306 = vmatprep.subr.mxu0 %v4154_v55 }
 0x26b   :  { %1101 = vmatprep.subr.mxu1 %v4257_v8  ;;  %1307 = vmatpush1.msra.mxu0 %v4164_v57 }
 0x26c   :  { %1102 = vmatpush1.msra.mxu1 %v4270_v10  ;;  %1308 = vmatprep.subr.mxu0 %v4172_v58 }
 0x26d   :  { %3554 = vmatmul.mubr.msk.f32.vlgmr.msra.gmra.mxu1 %vm233_vm5, %v4378_v23  ;;  %1373 = vmatprep.subr.mxu1 %v4187_v60 }
 0x26e   :  { %1374 = vmatpush1.msra.mxu1 %v4206_v63  ;;  %1309 = vmatpush1.msra.mxu0 %v4178_v59 }
 0x26f   :  { %1375 = vmatprep.subr.mxu1 %v4226_v2  ;;  %1342 = vmatprep.mubr.f32.mxu0 %v3931_v7 }
 0x270   :  { %1376 = vmatpush1.msra.mxu1 %v4245_v5  ;;  %1413 = vmatprep.mubr.f32.mxu1 %v3931_v7 }
 0x271   :  { %1377 = vmatprep.subr.mxu1 %v4265_v9  ;;  %1444 = vmatprep.subr.mxu0 %v4192_v61 }
 0x272   :  { %1378 = vmatpush1.msra.mxu1 %v4279_v11 }
 0x273   :  { %1379 = vmatprep.subr.mxu1 %v4286_v12 }
 0x274   :  { %1380 = vmatpush1.msra.mxu1 %v4293_v13 }
 0x275   :  { %1625 = vmatprep.subr.mxu1 %v4098_v41 }
 0x325   :  { %v995_v48 = vpop.f32.mrf.mxu1  ;;  %v1066_v51 = vpop.f32.mrf.mxu0 }
 0x326   :  { %v996_v53 = vadd.f32 %v995_v48, %v899_v44 }
 0x327   :  { %v997_v56 = vpop.f32.mrf.mxu1  ;;  %v1068_v24 = vpop.f32.mrf.mxu0 }
 0x328   :  { %v1143_v25 = vrot.slane %v996_v53, 4  ;;  %v998_v28 = vadd.f32 %v997_v56, %v903_v17  ;;  %v1069_v29 = vadd.f32 %v1068_v24, %v911_v46  ;;  %v907_v46 = vrot.slane %v894_v62, %v4333_v16 }
 0x329   :  { %v919_v53 = vrot.slane %v894_v62, %v4357_v54 }
 0x32a   :  { %v1145_v41 = vadd.f32 %v1143_v25, %v864_v30  ;;  %v1169_v31 = vrot.slane %v1069_v29, 4  ;;  %v1153_v27 = vrot.slane %v998_v28, 4  ;;  %v1067_v56 = vadd.f32 %v1066_v51, %v907_v46 }
 0x32c   :  { %v3555_v35 = vmul.f32 -1.442695, %v1145_v41  ;;  %v1171_v36 = vadd.f32 %v1169_v31, %v867_v34  ;;  %v1155_v37 = vadd.f32 %v1153_v27, %v865_v21  ;;  %v1163_v30 = vrot.slane %v1067_v56, 4  ;;  %v866_v34 = vld [vmem:[#allocation2 + $0x10] sm:$0xf0] }
 0x32d   :  { %v1137_v26 = vpop.f32.mrf.mxu1 }
 0x32e   :  { %3786 = vpow2.f32 %v3555_v35  ;;  %v3557_v20 = vmul.f32 -1.442695, %v1171_v36  ;;  %v1138_v33 = vadd.f32 %v1137_v26, %v915_v32  ;;  %v3556_v40 = vmul.f32 -1.442695, %v1155_v37 }
 0x32f   :  { %v1139_v24 = vpop.f32.mrf.mxu1 }
 0x330   :  { %v1179_v38 = vrot.slane %v1138_v33, 4  ;;  %3788 = vpow2.f32 %v3557_v20  ;;  %v1140_v29 = vadd.f32 %v1139_v24, %v919_v53  ;;  %v869_v20 = vld [vmem:[#allocation2 + $0x28] sm:$0xf0] }
 0x331   :  { %3790 = vpow2.f32 %v3556_v40 }
 0x332   :  { %v1181_v39 = vadd.f32 %v1179_v38, %v868_v49  ;;  %v1189_v35 = vrot.slane %v1140_v29, 4  ;;  %v1196_v38 = vrot.slane %v4378_v23, 4 }
 0x334   :  { %v3558_v42 = vmul.f32 -1.442695, %v1181_v39 }
 0x336   :  { %3792 = vpow2.f32 %v3558_v42 }
 0x33b   :  { %v3787_v43 = vpop.eup %3786 }
 0x33c   :  { %v1149_v22 = vadd.f32 1.0, %v3787_v43 }
 0x33d   :  { %v3789_v44 = vpop.eup %3788 }
 0x33e   :  { %3794 = vrcp.f32 %v1149_v22  ;;  %v1175_v17 = vadd.f32 1.0, %v3789_v44  ;;  %v3791_v48 = vpop.eup %3790 }
 0x33f   :  { %v1159_v28 = vadd.f32 1.0, %v3791_v48 }
 0x340   :  { %3796 = vrcp.f32 %v1175_v17 }
 0x341   :  { %3798 = vrcp.f32 %v1159_v28 }
 0x343   :  { %v3793_v25 = vpop.eup %3792 }
 0x344   :  { %v1185_v31 = vadd.f32 1.0, %v3793_v25  ;;  %v1214_v25 = vld [vmem:[#allocation2 + $0x78] sm:$0xf] }
 0x346   :  { %3800 = vrcp.f32 %v1185_v31 }
 0x34b   :  { %v3795_v41 = vpop.eup %3794 }
 0x34c   :  { %v1165_v32 = vmul.f32 %v3795_v41, %v1163_v30  ;;  %v1217_v30 = vld [vmem:[#allocation2 + $0x18] sm:$0xf] }
 0x34d   :  { %v3797_v27 = vpop.eup %3796 }
 0x34e   :  { %v1166_v36 = vadd.f32 %v1165_v32, %v866_v34  ;;  %v1191_v26 = vmul.f32 %v3797_v27, %v1189_v35  ;;  %v3799_v62 = vpop.eup %3798 }
 0x34f   :  { %v1194_v21 = vsub.f32 1.0, %v3799_v62  ;;  %v1198_v39 = vmul.f32 %v3799_v62, %v1196_v38 }
 0x350   :  { %3802 = vtanh.f32 %v1166_v36  ;;  %v1192_v33 = vadd.f32 %v1191_v26, %v869_v20 }
 0x352   :  { %3804 = vtanh.f32 %v1192_v33 }
 0x353   :  { %v3801_v51 = vpop.eup %3800 }
 0x354   :  { %v1200_v40 = vsub.f32 1.0, %v3801_v51  ;;  %v1202_v44 = vmul.f32 %v3801_v51, %v1196_v38 }
 0x35d   :  { %v3803_v37 = vpop.eup %3802 }
 0x35e   :  { %v1195_v49 = vmul.f32 %v3803_v37, %v1194_v21 }
 0x35f   :  { %v3805_v42 = vpop.eup %3804 }
 0x360   :  { %v1199_v43 = vadd.f32 %v1198_v39, %v1195_v49  ;;  %v1201_v22 = vmul.f32 %v3805_v42, %v1200_v40  ;;  %v1215_v40 = vld [vmem:[#allocation2 + $0x88] sm:$0xf] }
 0x362   :  { %v1203_v17 = vadd.f32 %v1202_v44, %v1201_v22  ;;  %v1205_v46 = vrot.slane %v1199_v43, 4 }
 0x364   :  { %v1208_v48 = vrot.slane %v1203_v17, 4  ;;  %v1218_v17 = vld [vmem:[#allocation2 + $0x98] sm:$0xf] }
 0x366   :  { %v4427_v53 = vsel %vm539_vm6, %v1205_v46, %v1208_v48 }
 0x367   :  { %1211 = vst [vmem:[#allocation3 + $0x2] sm:$0x3] %v4427_v53  ;;  %1212 = vst [vmem:[#allocation4 + $0xa] sm:$0xc] %v4427_v53  ;;  %3559 = vmatmul.mubr.msk.f32.vlgmr.msra.gmra.mxu0 %vm233_vm5, %v4427_v53  ;;  %3560 = vmatmul.mubr.msk.f32.vlgmr.msra.gmra.mxu1 %vm233_vm5, %v4427_v53 }
 0x368   :  { %1445 = vmatpush1.msra.mxu0 %v4211_v0  ;;  %1484 = vmatprep.mubr.f32.mxu0 %v3931_v7 }
 0x369   :  { %1446 = vmatprep.subr.mxu0 %v4218_v1  ;;  %1626 = vmatpush1.msra.mxu1 %v4117_v47  ;;  %v1243_v47 = vld [vmem:[%s4952_s5] sm:$0x3f] }
 0x36a   :  { %1447 = vmatpush1.msra.mxu0 %v4231_v3  ;;  %1627 = vmatprep.subr.mxu1 %v4130_v50  ;;  %v1248_v50 = vrot.slane %v1243_v47, %v4330_v15  ;;  %v1256_v20 = vrot.slane %v1243_v47, %v4333_v16  ;;  %v1268_v51 = vrot.slane %v1243_v47, %v4357_v54 }
 0x36b   :  { %1448 = vmatprep.subr.mxu0 %v4238_v4  ;;  %1628 = vmatpush1.msra.mxu1 %v4142_v52  ;;  %v1260_v52 = vrot.slane %v1243_v47, %v4342_v19 }
 0x36c   :  { %1449 = vmatpush1.msra.mxu0 %v4250_v6  ;;  %1629 = vmatprep.subr.mxu1 %v4154_v55 }
 0x36d   :  { %1450 = vmatprep.subr.mxu0 %v4257_v8  ;;  %1630 = vmatpush1.msra.mxu1 %v4164_v57 }
 0x36e   :  { %1451 = vmatpush1.msra.mxu0 %v4270_v10  ;;  %1631 = vmatprep.subr.mxu1 %v4172_v58 }
 0x36f   :  { %3561 = vmatmul.mubr.msk.f32.vlgmr.msra.gmra.mxu0 %vm233_vm5, %v4427_v53  ;;  %1696 = vmatprep.subr.mxu0 %v4187_v60  ;;  %v1252_v60 = vrot.slane %v1243_v47, %v4339_v18 }
 0x370   :  { %1697 = vmatpush1.msra.mxu0 %v4206_v63  ;;  %1632 = vmatpush1.msra.mxu1 %v4178_v59  ;;  %v1213_v59 = vld [vmem:[#allocation2 + $0x40] sm:$0xf] }
 0x371   :  { %1698 = vmatprep.subr.mxu0 %v4226_v2  ;;  %1665 = vmatprep.mubr.f32.mxu1 %v3931_v7 }
 0x372   :  { %1699 = vmatpush1.msra.mxu0 %v4245_v5  ;;  %1736 = vmatprep.mubr.f32.mxu0 %v3931_v7 }
 0x373   :  { %1700 = vmatprep.subr.mxu0 %v4265_v9  ;;  %1767 = vmatprep.subr.mxu1 %v4192_v61  ;;  %v1216_v9 = vld [vmem:[#allocation2 + $0x90] sm:$0xf] }
 0x374   :  { %1701 = vmatpush1.msra.mxu0 %v4279_v11 }
 0x375   :  { %1702 = vmatprep.subr.mxu0 %v4286_v12 }
 0x376   :  { %1703 = vmatpush1.msra.mxu0 %v4293_v13  ;;  %v1264_v13 = vrot.slane %v1243_v47, %v4349_v45 }
 0x427   :  { %v1344_v55 = vpop.f32.mrf.mxu0  ;;  %v1415_v57 = vpop.f32.mrf.mxu1 }
 0x428   :  { %v1345_v58 = vadd.f32 %v1344_v55, %v1248_v50  ;;  %v1416_v21 = vadd.f32 %v1415_v57, %v1256_v20 }
 0x429   :  { %v1417_v61 = vpop.f32.mrf.mxu1  ;;  %v1346_v2 = vpop.f32.mrf.mxu0 }
 0x42a   :  { %v1491_v63 = vadd.f32 %v1345_v58, %v1213_v59  ;;  %v1418_v5 = vadd.f32 %v1417_v61, %v1260_v52  ;;  %v1347_v23 = vadd.f32 %v1346_v2, %v1252_v60 }
 0x42c   :  { %v3562_v11 = vmul.f32 -1.442695, %v1491_v63  ;;  %v1508_v12 = vadd.f32 %v1418_v5, %v1216_v9  ;;  %v1498_v29 = vadd.f32 %v1347_v23, %v1214_v25  ;;  %v4543_v9 = vld [vmem:[%s4949_s4 + $0x70] sm:$0xff]  ;;  %v4567_v23 = vld [vmem:[%s4949_s4 + $0x40] sm:$0xff] }
 0x42d   :  { %v4584_v25 = vld [vmem:[%s4949_s4 + $0x10] sm:$0xff] }
 0x42e   :  { %3806 = vpow2.f32 %v3562_v11  ;;  %v3564_v56 = vmul.f32 -1.442695, %v1508_v12  ;;  %v3563_v31 = vmul.f32 -1.442695, %v1498_v29  ;;  %v4550_v11 = vld [vmem:[%s4949_s4 + $0x30] sm:$0xff]  ;;  %v4555_v12 = vld [vmem:[%s4949_s4 + $0x48] sm:$0xff] }
 0x42f   :  { %v1486_v24 = vpop.f32.mrf.mxu0  ;;  %v1566_v29 = vld [vmem:[%s4952_s5] sm:$0x3f] }
 0x430   :  { %v1487_v28 = vadd.f32 %v1486_v24, %v1264_v13  ;;  %3808 = vpow2.f32 %v3564_v56  ;;  %v4562_v13 = vld [vmem:[%s4949_s4 + $0x8] sm:$0xff]  ;;  %v4572_v56 = vld [vmem:[%s4949_s4 + $0x18] sm:$0xff]  ;;  %v4579_v24 = vld [vmem:[%s4949_s4] sm:$0xff] }
 0x431   :  { %3810 = vpow2.f32 %v3563_v31  ;;  %v1488_v37 = vpop.f32.mrf.mxu0  ;;  %v1583_v31 = vrot.slane %v1566_v29, %v4342_v19 }
 0x432   :  { %v1515_v41 = vadd.f32 %v1487_v28, %v1217_v30  ;;  %v1489_v42 = vadd.f32 %v1488_v37, %v1268_v51  ;;  %v4591_v28 = vld [vmem:[%s4949_s4 + $0xb8] sm:$0xff]  ;;  %v1571_v30 = vrot.slane %v1566_v29, %v4330_v15  ;;  %v1587_v37 = vrot.slane %v1566_v29, %v4349_v45 }
 0x434   :  { %v3565_v32 = vmul.f32 -1.442695, %v1515_v41  ;;  %v1575_v41 = vrot.slane %v1566_v29, %v4339_v18 }
 0x436   :  { %3812 = vpow2.f32 %v3565_v32 }
 0x43b   :  { %v3807_v34 = vpop.eup %3806 }
 0x43c   :  { %v1495_v35 = vadd.f32 1.0, %v3807_v34 }
 0x43d   :  { %v3809_v27 = vpop.eup %3808 }
 0x43e   :  { %3814 = vrcp.f32 %v1495_v35  ;;  %v1512_v36 = vadd.f32 1.0, %v3809_v27  ;;  %v3811_v26 = vpop.eup %3810 }
 0x43f   :  { %v1502_v62 = vadd.f32 1.0, %v3811_v26 }
 0x440   :  { %3816 = vrcp.f32 %v1512_v36 }
 0x441   :  { %3818 = vrcp.f32 %v1502_v62  ;;  %v1536_v62 = vld [vmem:[#allocation2 + $0x40] sm:$0xf0] }
 0x443   :  { %v3813_v33 = vpop.eup %3812 }
 0x444   :  { %v1519_v49 = vadd.f32 1.0, %v3813_v33 }
 0x446   :  { %3820 = vrcp.f32 %v1519_v49 }
 0x44b   :  { %v3815_v38 = vpop.eup %3814 }
 0x44c   :  { %v1505_v39 = vmul.f32 %v3815_v38, %v1416_v21  ;;  %v1539_v38 = vld [vmem:[#allocation2 + $0x90] sm:$0xf0] }
 0x44d   :  { %v3817_v43 = vpop.eup %3816 }
 0x44e   :  { %v1506_v22 = vadd.f32 %v1505_v39, %v1215_v40  ;;  %v1522_v44 = vmul.f32 %v3817_v43, %v1489_v42  ;;  %v3819_v48 = vpop.eup %3818 }
 0x44f   :  { %v1525_v47 = vsub.f32 1.0, %v3819_v48  ;;  %v1527_v59 = vmul.f32 %v3819_v48, %v4427_v53  ;;  %v1540_v48 = vld [vmem:[#allocation2 + $0x18] sm:$0xf0] }
 0x450   :  { %3822 = vtanh.f32 %v1506_v22  ;;  %v1523_v46 = vadd.f32 %v1522_v44, %v1218_v17  ;;  %v1537_v44 = vld [vmem:[#allocation2 + $0x78] sm:$0xf0] }
 0x452   :  { %3824 = vtanh.f32 %v1523_v46 }
 0x453   :  { %v3821_v50 = vpop.eup %3820 }
 0x454   :  { %v1529_v57 = vsub.f32 1.0, %v3821_v50  ;;  %v1531_v61 = vmul.f32 %v3821_v50, %v4427_v53  ;;  %v4538_v53 = vld [vmem:[%s4949_s4 + $0x38] sm:$0xff] }
 0x45d   :  { %v3823_v52 = vpop.eup %3822 }
 0x45e   :  { %v1526_v55 = vmul.f32 %v3823_v52, %v1525_v47 }
 0x45f   :  { %v3825_v58 = vpop.eup %3824 }
 0x460   :  { %v1530_v60 = vmul.f32 %v3825_v58, %v1529_v57  ;;  %v1528_v63 = vadd.f32 %v1527_v59, %v1526_v55 }
 0x462   :  { %v1532_v2 = vadd.f32 %v1531_v61, %v1530_v60  ;;  %v1579_v60 = vrot.slane %v1566_v29, %v4333_v16 }
 0x464   :  { %v4476_v5 = vsel %vm539_vm6, %v1528_v63, %v1532_v2  ;;  %v1591_v63 = vrot.slane %v1566_v29, %v4357_v54 }
 0x465   :  { %1534 = vst [vmem:[#allocation3 + $0x4] sm:$0x3] %v4476_v5  ;;  %1535 = vst [vmem:[#allocation4 + $0x8] sm:$0xc] %v4476_v5  ;;  %3566 = vmatmul.mubr.msk.f32.vlgmr.msra.gmra.mxu1 %vm233_vm5, %v4476_v5  ;;  %3567 = vmatmul.mubr.msk.f32.vlgmr.msra.gmra.mxu0 %vm233_vm5, %v4476_v5 }
 0x466   :  { %1768 = vmatpush1.msra.mxu1 %v4211_v0  ;;  %1807 = vmatprep.mubr.f32.mxu1 %v3931_v7  ;;  %v4499_v0 = vld [vmem:[%s4949_s4 + $0x98] sm:$0xff] }
 0x467   :  { %1769 = vmatprep.subr.mxu1 %v4218_v1  ;;  %2014 = vmatprep.mubr.f32.mxu0 %v3931_v7  ;;  %v4504_v1 = vld [vmem:[%s4949_s4 + $0x90] sm:$0xff] }
 0x468   :  { %1770 = vmatpush1.msra.mxu1 %v4231_v3  ;;  %v4509_v3 = vld [vmem:[%s4949_s4 + $0xa8] sm:$0xff]  ;;  %1974 = vmatprep.subr.mxu0 %v4499_v0 }
 0x469   :  { %1771 = vmatprep.subr.mxu1 %v4238_v4  ;;  %v4516_v4 = vld [vmem:[%s4949_s4 + $0x68] sm:$0xff]  ;;  %1975 = vmatpush1.msra.mxu0 %v4504_v1 }
 0x46a   :  { %1772 = vmatpush1.msra.mxu1 %v4250_v6  ;;  %v4521_v6 = vld [vmem:[%s4949_s4 + $0xa0] sm:$0xff]  ;;  %1976 = vmatprep.subr.mxu0 %v4516_v4 }
 0x46b   :  { %1773 = vmatprep.subr.mxu1 %v4257_v8  ;;  %v4526_v8 = vld [vmem:[%s4949_s4 + $0x60] sm:$0xff] }
 0x46c   :  { %1774 = vmatpush1.msra.mxu1 %v4270_v10  ;;  %v4533_v10 = vld [vmem:[%s4949_s4 + $0x78] sm:$0xff]  ;;  %1977 = vmatpush1.msra.mxu0 %v4526_v8 }
 0x46d   :  { %3568 = vmatmul.mubr.msk.f32.vlgmr.msra.gmra.mxu1 %vm233_vm5, %v4476_v5  ;;  %2045 = vmatprep.subr.mxu1 %v4509_v3 }
 0x46e   :  { %2085 = vmatprep.mubr.f32.mxu1 %v3931_v7  ;;  %2046 = vmatpush1.msra.mxu1 %v4521_v6 }
 0x46f   :  { %2047 = vmatprep.subr.mxu1 %v4533_v10  ;;  %1978 = vmatprep.subr.mxu0 %v4538_v53 }
 0x470   :  { %2048 = vmatpush1.msra.mxu1 %v4543_v9  ;;  %1979 = vmatpush1.msra.mxu0 %v4550_v11 }
 0x471   :  { %2049 = vmatprep.subr.mxu1 %v4555_v12  ;;  %1980 = vmatprep.subr.mxu0 %v4562_v13 }
 0x472   :  { %2050 = vmatpush1.msra.mxu1 %v4567_v23  ;;  %1981 = vmatpush1.msra.mxu0 %v4579_v24 }
 0x473   :  { %2051 = vmatprep.subr.mxu1 %v4572_v56  ;;  %2116 = vmatprep.subr.mxu0 %v4591_v28 }
 0x474   :  { %2052 = vmatpush1.msra.mxu1 %v4584_v25 }
 0x475   :  { %2297 = vmatprep.subr.mxu1 %v4499_v0 }
 0x525   :  { %v1667_v32 = vpop.f32.mrf.mxu1  ;;  %v1738_v34 = vpop.f32.mrf.mxu0 }
 0x526   :  { %v1668_v35 = vadd.f32 %v1667_v32, %v1571_v30  ;;  %v1739_v2 = vadd.f32 %v1738_v34, %v1579_v60  ;;  %v4645_v60 = vld [vmem:[%s4949_s4 + $0x50] sm:$0xff] }
 0x527   :  { %v1669_v27 = vpop.f32.mrf.mxu1  ;;  %v1740_v36 = vpop.f32.mrf.mxu0 }
 0x528   :  { %v1815_v26 = vrot.slane %v1668_v35, 4  ;;  %v1670_v20 = vadd.f32 %v1669_v27, %v1575_v41  ;;  %v1741_v33 = vadd.f32 %v1740_v36, %v1583_v31  ;;  %v1835_v35 = vrot.slane %v1739_v2, 4  ;;  %v1915_v2 = vld [vmem:[%s4952_s5] sm:$0x3f] }
 0x52a   :  { %v1817_v51 = vadd.f32 %v1815_v26, %v1536_v62  ;;  %v1841_v21 = vrot.slane %v1741_v33, 4  ;;  %v1825_v39 = vrot.slane %v1670_v20, 4  ;;  %v1538_v20 = vld [vmem:[#allocation2 + $0x88] sm:$0xf0] }
 0x52c   :  { %v3569_v49 = vmul.f32 -1.442695, %v1817_v51  ;;  %v1843_v40 = vadd.f32 %v1841_v21, %v1539_v38  ;;  %v1827_v17 = vadd.f32 %v1825_v39, %v1537_v44 }
 0x52d   :  { %v1809_v42 = vpop.f32.mrf.mxu1 }
 0x52e   :  { %3826 = vpow2.f32 %v3569_v49  ;;  %v3571_v43 = vmul.f32 -1.442695, %v1843_v40  ;;  %v1810_v22 = vadd.f32 %v1809_v42, %v1587_v37  ;;  %v3570_v52 = vmul.f32 -1.442695, %v1827_v17  ;;  %v1541_v37 = vld [vmem:[#allocation2 + $0x98] sm:$0xf0] }
 0x52f   :  { %v1811_v30 = vpop.f32.mrf.mxu1  ;;  %v1868_v40 = vrot.slane %v4476_v5, 4  ;;  %v4621_v5 = vld [vmem:[%s4949_s4 + $0x88] sm:$0xff] }
 0x530   :  { %v1851_v46 = vrot.slane %v1810_v22, 4  ;;  %3828 = vpow2.f32 %v3571_v43  ;;  %v1812_v32 = vadd.f32 %v1811_v30, %v1591_v63  ;;  %v4659_v63 = vld [vmem:[%s4949_s4 + $0x20] sm:$0xff]  ;;  %v1920_v30 = vrot.slane %v1915_v2, %v4330_v15 }
 0x531   :  { %3830 = vpow2.f32 %v3570_v52 }
 0x532   :  { %v1853_v50 = vadd.f32 %v1851_v46, %v1540_v48  ;;  %v1861_v33 = vrot.slane %v1812_v32, 4 }
 0x534   :  { %v3572_v47 = vmul.f32 -1.442695, %v1853_v50 }
 0x536   :  { %3832 = vpow2.f32 %v3572_v47 }
 0x53b   :  { %v3827_v55 = vpop.eup %3826 }
 0x53c   :  { %v1821_v57 = vadd.f32 1.0, %v3827_v55  ;;  %v4612_v55 = vld [vmem:[%s4949_s4 + $0xb0] sm:$0xff] }
 0x53d   :  { %v3829_v58 = vpop.eup %3828 }
 0x53e   :  { %3834 = vrcp.f32 %v1821_v57  ;;  %v1847_v59 = vadd.f32 1.0, %v3829_v58  ;;  %v3831_v61 = vpop.eup %3830  ;;  %v4632_v58 = vld [vmem:[%s4949_s4 + $0x80] sm:$0xff] }
 0x53f   :  { %v1831_v31 = vadd.f32 1.0, %v3831_v61  ;;  %v4652_v61 = vld [vmem:[%s4949_s4 + $0x28] sm:$0xff] }
 0x540   :  { %3836 = vrcp.f32 %v1847_v59  ;;  %v4638_v59 = vld [vmem:[%s4949_s4 + $0x58] sm:$0xff] }
 0x541   :  { %3838 = vrcp.f32 %v1831_v31 }
 0x543   :  { %v3833_v41 = vpop.eup %3832 }
 0x544   :  { %v1857_v36 = vadd.f32 1.0, %v3833_v41  ;;  %v1932_v41 = vrot.slane %v1915_v2, %v4342_v19 }
 0x546   :  { %3840 = vrcp.f32 %v1857_v36  ;;  %v1924_v36 = vrot.slane %v1915_v2, %v4339_v18 }
 0x54b   :  { %v3835_v27 = vpop.eup %3834 }
 0x54c   :  { %v1837_v26 = vmul.f32 %v3835_v27, %v1835_v35  ;;  %v1885_v27 = vld [vmem:[#allocation2 + $0x38] sm:$0xf] }
 0x54d   :  { %v3837_v62 = vpop.eup %3836 }
 0x54e   :  { %v1838_v51 = vadd.f32 %v1837_v26, %v1538_v20  ;;  %v1863_v21 = vmul.f32 %v3837_v62, %v1861_v33  ;;  %v3839_v29 = vpop.eup %3838 }
 0x54f   :  { %v1866_v49 = vsub.f32 1.0, %v3839_v29  ;;  %v1870_v43 = vmul.f32 %v3839_v29, %v1868_v40 }
 0x550   :  { %3842 = vtanh.f32 %v1838_v51  ;;  %v1864_v38 = vadd.f32 %v1863_v21, %v1541_v37  ;;  %v1888_v51 = vld [vmem:[#allocation2 + $0xa0] sm:$0xf] }
 0x552   :  { %3844 = vtanh.f32 %v1864_v38  ;;  %v1936_v38 = vrot.slane %v1915_v2, %v4349_v45 }
 0x553   :  { %v3841_v34 = vpop.eup %3840 }
 0x554   :  { %v1872_v22 = vsub.f32 1.0, %v3841_v34  ;;  %v1874_v48 = vmul.f32 %v3841_v34, %v1868_v40 }
 0x55d   :  { %v3843_v39 = vpop.eup %3842 }
 0x55e   :  { %v1867_v42 = vmul.f32 %v3843_v39, %v1866_v49  ;;  %v1886_v39 = vld [vmem:[#allocation2 + $0x50] sm:$0xf] }
 0x55f   :  { %v3845_v44 = vpop.eup %3844 }
 0x560   :  { %v1871_v17 = vadd.f32 %v1870_v43, %v1867_v42  ;;  %v1873_v46 = vmul.f32 %v3845_v44, %v1872_v22  ;;  %v1889_v43 = vld [vmem:[#allocation2 + $0xa8] sm:$0xf] }
 0x562   :  { %v1875_v50 = vadd.f32 %v1874_v48, %v1873_v46  ;;  %v1877_v52 = vrot.slane %v1871_v17, 4 }
 0x564   :  { %v1880_v47 = vrot.slane %v1875_v50, 4 }
 0x566   :  { %v4616_v57 = vsel %vm539_vm6, %v1877_v52, %v1880_v47 }
 0x567   :  { %1883 = vst [vmem:[#allocation3 + $0x6] sm:$0x3] %v4616_v57  ;;  %1884 = vst [vmem:[#allocation4 + $0x6] sm:$0xc] %v4616_v57  ;;  %3573 = vmatmul.mubr.msk.f32.vlgmr.msra.gmra.mxu0 %vm233_vm5, %v4616_v57  ;;  %3574 = vmatmul.mubr.msk.f32.vlgmr.msra.gmra.mxu1 %vm233_vm5, %v4616_v57 }
 0x568   :  { %2117 = vmatpush1.msra.mxu0 %v4612_v55  ;;  %2156 = vmatprep.mubr.f32.mxu0 %v3931_v7 }
 0x569   :  { %2118 = vmatprep.subr.mxu0 %v4621_v5  ;;  %2298 = vmatpush1.msra.mxu1 %v4504_v1 }
 0x56a   :  { %2119 = vmatpush1.msra.mxu0 %v4632_v58  ;;  %2299 = vmatprep.subr.mxu1 %v4516_v4 }
 0x56b   :  { %2120 = vmatprep.subr.mxu0 %v4638_v59  ;;  %2300 = vmatpush1.msra.mxu1 %v4526_v8 }
 0x56c   :  { %2121 = vmatpush1.msra.mxu0 %v4645_v60  ;;  %2301 = vmatprep.subr.mxu1 %v4538_v53 }
 0x56d   :  { %2122 = vmatprep.subr.mxu0 %v4652_v61  ;;  %2302 = vmatpush1.msra.mxu1 %v4550_v11 }
 0x56e   :  { %2123 = vmatpush1.msra.mxu0 %v4659_v63  ;;  %2303 = vmatprep.subr.mxu1 %v4562_v13 }
 0x56f   :  { %3575 = vmatmul.mubr.msk.f32.vlgmr.msra.gmra.mxu0 %vm233_vm5, %v4616_v57  ;;  %2368 = vmatprep.subr.mxu0 %v4509_v3 }
 0x570   :  { %2369 = vmatpush1.msra.mxu0 %v4521_v6  ;;  %2304 = vmatpush1.msra.mxu1 %v4579_v24 }
 0x571   :  { %2370 = vmatprep.subr.mxu0 %v4533_v10  ;;  %2337 = vmatprep.mubr.f32.mxu1 %v3931_v7 }
 0x572   :  { %2371 = vmatpush1.msra.mxu0 %v4543_v9  ;;  %2408 = vmatprep.mubr.f32.mxu0 %v3931_v7 }
 0x573   :  { %2372 = vmatprep.subr.mxu0 %v4555_v12  ;;  %2439 = vmatprep.subr.mxu1 %v4591_v28 }
 0x574   :  { %2373 = vmatpush1.msra.mxu0 %v4567_v23 }
 0x575   :  { %2374 = vmatprep.subr.mxu0 %v4572_v56 }
 0x576   :  { %2375 = vmatpush1.msra.mxu0 %v4584_v25 }
 0x577   :  { %2646 = vmatprep.subr.mxu0 %v4499_v0 }
 0x627   :  { %v2016_v31 = vpop.f32.mrf.mxu0  ;;  %v2087_v32 = vpop.f32.mrf.mxu1 }
 0x628   :  { %v2017_v35 = vadd.f32 %v2016_v31, %v1920_v30  ;;  %v1928_v30 = vrot.slane %v1915_v2, %v4333_v16 }
 0x629   :  { %v2089_v26 = vpop.f32.mrf.mxu1  ;;  %v2018_v33 = vpop.f32.mrf.mxu0 }
 0x62a   :  { %v2163_v20 = vadd.f32 %v2017_v35, %v1885_v27  ;;  %v2090_v62 = vadd.f32 %v2089_v26, %v1932_v41  ;;  %v2019_v29 = vadd.f32 %v2018_v33, %v1924_v36  ;;  %v1940_v35 = vrot.slane %v1915_v2, %v4357_v54 }
 0x62b   :  { %v2088_v27 = vadd.f32 %v2087_v32, %v1928_v30 }
 0x62c   :  { %v3576_v21 = vmul.f32 -1.442695, %v2163_v20  ;;  %v2180_v37 = vadd.f32 %v2090_v62, %v1888_v51  ;;  %v2170_v42 = vadd.f32 %v2019_v29, %v1886_v39  ;;  %v1887_v62 = vld [vmem:[#allocation2 + $0x70] sm:$0xf]  ;;  %v1890_v29 = vld [vmem:[#allocation2 + $0x68] sm:$0xf] }
 0x62e   :  { %3846 = vpow2.f32 %v3576_v21  ;;  %v3578_v34 = vmul.f32 -1.442695, %v2180_v37  ;;  %v3577_v44 = vmul.f32 -1.442695, %v2170_v42 }
 0x62f   :  { %v2158_v49 = vpop.f32.mrf.mxu0 }
 0x630   :  { %v2159_v40 = vadd.f32 %v2158_v49, %v1936_v38  ;;  %3848 = vpow2.f32 %v3578_v34 }
 0x631   :  { %3850 = vpow2.f32 %v3577_v44  ;;  %v2160_v36 = vpop.f32.mrf.mxu0 }
 0x632   :  { %v2187_v22 = vadd.f32 %v2159_v40, %v1889_v43  ;;  %v2161_v51 = vadd.f32 %v2160_v36, %v1940_v35 }
 0x634   :  { %v3579_v17 = vmul.f32 -1.442695, %v2187_v22 }
 0x636   :  { %3852 = vpow2.f32 %v3579_v17 }
 0x63b   :  { %v3847_v46 = vpop.eup %3846 }
 0x63c   :  { %v2167_v48 = vadd.f32 1.0, %v3847_v46 }
 0x63d   :  { %v3849_v50 = vpop.eup %3848 }
 0x63e   :  { %3854 = vrcp.f32 %v2167_v48  ;;  %v2184_v52 = vadd.f32 1.0, %v3849_v50  ;;  %v3851_v47 = vpop.eup %3850 }
 0x63f   :  { %v2174_v31 = vadd.f32 1.0, %v3851_v47 }
 0x640   :  { %3856 = vrcp.f32 %v2184_v52 }
 0x641   :  { %3858 = vrcp.f32 %v2174_v31 }
 0x643   :  { %v3853_v41 = vpop.eup %3852 }
 0x644   :  { %v2191_v20 = vadd.f32 1.0, %v3853_v41 }
 0x646   :  { %3860 = vrcp.f32 %v2191_v20 }
 0x64b   :  { %v3855_v26 = vpop.eup %3854 }
 0x64c   :  { %v2177_v33 = vmul.f32 %v3855_v26, %v2088_v27 }
 0x64d   :  { %v3857_v21 = vpop.eup %3856 }
 0x64e   :  { %v2178_v37 = vadd.f32 %v2177_v33, %v1887_v62  ;;  %v2194_v38 = vmul.f32 %v3857_v21, %v2161_v51  ;;  %v3859_v49 = vpop.eup %3858  ;;  %v2208_v62 = vld [vmem:[#allocation2 + $0x38] sm:$0xf0] }
 0x64f   :  { %v2197_v2 = vsub.f32 1.0, %v3859_v49  ;;  %v2199_v22 = vmul.f32 %v3859_v49, %v4616_v57 }
 0x650   :  { %3862 = vtanh.f32 %v2178_v37  ;;  %v2195_v34 = vadd.f32 %v2194_v38, %v1890_v29  ;;  %v2211_v37 = vld [vmem:[#allocation2 + $0xa0] sm:$0xf0] }
 0x652   :  { %3864 = vtanh.f32 %v2195_v34 }
 0x653   :  { %v3861_v39 = vpop.eup %3860 }
 0x654   :  { %v2201_v42 = vsub.f32 1.0, %v3861_v39  ;;  %v2203_v17 = vmul.f32 %v3861_v39, %v4616_v57  ;;  %v2238_v57 = vld [vmem:[%s4952_s5] sm:$0x3f] }
 0x655   :  { %v2243_v52 = vrot.slane %v2238_v57, %v4330_v15  ;;  %v2247_v47 = vrot.slane %v2238_v57, %v4339_v18  ;;  %v2255_v30 = vrot.slane %v2238_v57, %v4342_v19  ;;  %v2259_v21 = vrot.slane %v2238_v57, %v4349_v45 }
 0x65d   :  { %v3863_v40 = vpop.eup %3862 }
 0x65e   :  { %v2198_v32 = vmul.f32 %v3863_v40, %v2197_v2  ;;  %v2209_v2 = vld [vmem:[#allocation2 + $0x50] sm:$0xf0] }
 0x65f   :  { %v3865_v43 = vpop.eup %3864 }
 0x660   :  { %v2202_v44 = vmul.f32 %v3865_v43, %v2201_v42  ;;  %v2200_v46 = vadd.f32 %v2199_v22, %v2198_v32  ;;  %v2212_v43 = vld [vmem:[#allocation2 + $0xa8] sm:$0xf0] }
 0x662   :  { %v2204_v48 = vadd.f32 %v2203_v17, %v2202_v44 }
 0x664   :  { %v4696_v50 = vsel %vm539_vm6, %v2200_v46, %v2204_v48 }
 0x665   :  { %2206 = vst [vmem:[#allocation3 + $0x8] sm:$0x3] %v4696_v50  ;;  %2207 = vst [vmem:[#allocation4 + $0x4] sm:$0xc] %v4696_v50  ;;  %3580 = vmatmul.mubr.msk.f32.vlgmr.msra.gmra.mxu1 %vm233_vm5, %v4696_v50  ;;  %3581 = vmatmul.mubr.msk.f32.vlgmr.msra.gmra.mxu0 %vm233_vm5, %v4696_v50 }
 0x666   :  { %2440 = vmatpush1.msra.mxu1 %v4612_v55  ;;  %2479 = vmatprep.mubr.f32.mxu1 %v3931_v7 }
 0x667   :  { %2441 = vmatprep.subr.mxu1 %v4621_v5  ;;  %2647 = vmatpush1.msra.mxu0 %v4504_v1 }
 0x668   :  { %2442 = vmatpush1.msra.mxu1 %v4632_v58  ;;  %2648 = vmatprep.subr.mxu0 %v4516_v4 }
 0x669   :  { %2443 = vmatprep.subr.mxu1 %v4638_v59  ;;  %2649 = vmatpush1.msra.mxu0 %v4526_v8 }
 0x66a   :  { %2444 = vmatpush1.msra.mxu1 %v4645_v60  ;;  %2650 = vmatprep.subr.mxu0 %v4538_v53 }
 0x66b   :  { %2445 = vmatprep.subr.mxu1 %v4652_v61  ;;  %2651 = vmatpush1.msra.mxu0 %v4550_v11 }
 0x66c   :  { %2446 = vmatpush1.msra.mxu1 %v4659_v63  ;;  %2652 = vmatprep.subr.mxu0 %v4562_v13 }
 0x66d   :  { %3582 = vmatmul.mubr.msk.f32.vlgmr.msra.gmra.mxu1 %vm233_vm5, %v4696_v50  ;;  %2717 = vmatprep.subr.mxu1 %v4509_v3 }
 0x66e   :  { %2718 = vmatpush1.msra.mxu1 %v4521_v6  ;;  %2653 = vmatpush1.msra.mxu0 %v4579_v24 }
 0x66f   :  { %2719 = vmatprep.subr.mxu1 %v4533_v10  ;;  %2686 = vmatprep.mubr.f32.mxu0 %v3931_v7 }
 0x670   :  { %2720 = vmatpush1.msra.mxu1 %v4543_v9  ;;  %2757 = vmatprep.mubr.f32.mxu1 %v3931_v7 }
 0x671   :  { %2721 = vmatprep.subr.mxu1 %v4555_v12  ;;  %2788 = vmatprep.subr.mxu0 %v4591_v28 }
 0x672   :  { %2722 = vmatpush1.msra.mxu1 %v4567_v23 }
 0x673   :  { %2723 = vmatprep.subr.mxu1 %v4572_v56 }
 0x674   :  { %2724 = vmatpush1.msra.mxu1 %v4584_v25 }
 0x675   :  { %2969 = vmatprep.subr.mxu1 %v4499_v0 }
 0x725   :  { %v2339_v41 = vpop.f32.mrf.mxu1  ;;  %v2410_v31 = vpop.f32.mrf.mxu0 }
 0x726   :  { %v2340_v35 = vadd.f32 %v2339_v41, %v2243_v52 }
 0x727   :  { %v2341_v27 = vpop.f32.mrf.mxu1  ;;  %v2412_v36 = vpop.f32.mrf.mxu0 }
 0x728   :  { %v2487_v26 = vrot.slane %v2340_v35, 4  ;;  %v2342_v20 = vadd.f32 %v2341_v27, %v2247_v47  ;;  %v2413_v33 = vadd.f32 %v2412_v36, %v2255_v30  ;;  %v2251_v30 = vrot.slane %v2238_v57, %v4333_v16 }
 0x729   :  { %v2263_v35 = vrot.slane %v2238_v57, %v4357_v54 }
 0x72a   :  { %v2489_v0 = vadd.f32 %v2487_v26, %v2208_v62  ;;  %v2513_v51 = vrot.slane %v2413_v33, 4  ;;  %v2497_v29 = vrot.slane %v2342_v20, 4  ;;  %v2411_v27 = vadd.f32 %v2410_v31, %v2251_v30 }
 0x72c   :  { %v3583_v38 = vmul.f32 -1.442695, %v2489_v0  ;;  %v2515_v34 = vadd.f32 %v2513_v51, %v2211_v37  ;;  %v2499_v32 = vadd.f32 %v2497_v29, %v2209_v2  ;;  %v2507_v62 = vrot.slane %v2411_v27, 4  ;;  %v2210_v37 = vld [vmem:[#allocation2 + $0x70] sm:$0xf0] }
 0x72d   :  { %v2481_v49 = vpop.f32.mrf.mxu1 }
 0x72e   :  { %3866 = vpow2.f32 %v3583_v38  ;;  %v3585_v39 = vmul.f32 -1.442695, %v2515_v34  ;;  %v2482_v40 = vadd.f32 %v2481_v49, %v2259_v21  ;;  %v3584_v44 = vmul.f32 -1.442695, %v2499_v32 }
 0x72f   :  { %v2483_v36 = vpop.f32.mrf.mxu1 }
 0x730   :  { %v2523_v42 = vrot.slane %v2482_v40, 4  ;;  %3868 = vpow2.f32 %v3585_v39  ;;  %v2484_v33 = vadd.f32 %v2483_v36, %v2263_v35  ;;  %v2213_v39 = vld [vmem:[#allocation2 + $0x68] sm:$0xf0] }
 0x731   :  { %3870 = vpow2.f32 %v3584_v44 }
 0x732   :  { %v2525_v22 = vadd.f32 %v2523_v42, %v2212_v43  ;;  %v2533_v38 = vrot.slane %v2484_v33, 4  ;;  %v2540_v42 = vrot.slane %v4696_v50, 4 }
 0x734   :  { %v3586_v17 = vmul.f32 -1.442695, %v2525_v22 }
 0x736   :  { %3872 = vpow2.f32 %v3586_v17 }
 0x73b   :  { %v3867_v46 = vpop.eup %3866 }
 0x73c   :  { %v2493_v48 = vadd.f32 1.0, %v3867_v46 }
 0x73d   :  { %v3869_v52 = vpop.eup %3868 }
 0x73e   :  { %3874 = vrcp.f32 %v2493_v48  ;;  %v2519_v47 = vadd.f32 1.0, %v3869_v52  ;;  %v3871_v41 = vpop.eup %3870 }
 0x73f   :  { %v2503_v20 = vadd.f32 1.0, %v3871_v41 }
 0x740   :  { %3876 = vrcp.f32 %v2519_v47 }
 0x741   :  { %3878 = vrcp.f32 %v2503_v20 }
 0x743   :  { %v3873_v26 = vpop.eup %3872 }
 0x744   :  { %v2529_v51 = vadd.f32 1.0, %v3873_v26  ;;  %v2558_v26 = vld [vmem:[#allocation2 + $0x58] sm:$0xf] }
 0x746   :  { %3880 = vrcp.f32 %v2529_v51 }
 0x74b   :  { %v3875_v0 = vpop.eup %3874 }
 0x74c   :  { %v2509_v21 = vmul.f32 %v3875_v0, %v2507_v62  ;;  %v2561_v62 = vld [vmem:[#allocation2 + $0x20] sm:$0xf] }
 0x74d   :  { %v3877_v29 = vpop.eup %3876 }
 0x74e   :  { %v2510_v34 = vadd.f32 %v2509_v21, %v2210_v37  ;;  %v2535_v49 = vmul.f32 %v3877_v29, %v2533_v38  ;;  %v3879_v57 = vpop.eup %3878 }
 0x74f   :  { %v2538_v2 = vsub.f32 1.0, %v3879_v57  ;;  %v2542_v22 = vmul.f32 %v3879_v57, %v2540_v42 }
 0x750   :  { %3882 = vtanh.f32 %v2510_v34  ;;  %v2536_v40 = vadd.f32 %v2535_v49, %v2213_v39 }
 0x752   :  { %3884 = vtanh.f32 %v2536_v40 }
 0x753   :  { %v3881_v31 = vpop.eup %3880 }
 0x754   :  { %v2544_v44 = vsub.f32 1.0, %v3881_v31  ;;  %v2546_v52 = vmul.f32 %v3881_v31, %v2540_v42 }
 0x75d   :  { %v3883_v32 = vpop.eup %3882 }
 0x75e   :  { %v2539_v43 = vmul.f32 %v3883_v32, %v2538_v2 }
 0x75f   :  { %v3885_v17 = vpop.eup %3884 }
 0x760   :  { %v2543_v46 = vadd.f32 %v2542_v22, %v2539_v43  ;;  %v2545_v48 = vmul.f32 %v3885_v17, %v2544_v44  ;;  %v2559_v44 = vld [vmem:[#allocation2 + $0x80] sm:$0xf] }
 0x762   :  { %v2547_v47 = vadd.f32 %v2546_v52, %v2545_v48  ;;  %v2549_v30 = vrot.slane %v2543_v46, 4 }
 0x764   :  { %v2552_v41 = vrot.slane %v2547_v47, 4  ;;  %v2562_v47 = vld [vmem:[#allocation2 + $0x8] sm:$0xf] }
 0x766   :  { %v4745_v35 = vsel %vm539_vm6, %v2549_v30, %v2552_v41 }
 0x767   :  { %2555 = vst [vmem:[#allocation3 + $0xa] sm:$0x3] %v4745_v35  ;;  %2556 = vst [vmem:[#allocation4 + $0x2] sm:$0xc] %v4745_v35  ;;  %3587 = vmatmul.mubr.msk.f32.vlgmr.msra.gmra.mxu0 %vm233_vm5, %v4745_v35  ;;  %3588 = vmatmul.mubr.msk.f32.vlgmr.msra.gmra.mxu1 %vm233_vm5, %v4745_v35 }
 0x768   :  { %2789 = vmatpush1.msra.mxu0 %v4612_v55  ;;  %2828 = vmatprep.mubr.f32.mxu0 %v3931_v7 }
 0x769   :  { %2790 = vmatprep.subr.mxu0 %v4621_v5  ;;  %2970 = vmatpush1.msra.mxu1 %v4504_v1  ;;  %v2587_v1 = vld [vmem:[%s4952_s5] sm:$0x3f] }
 0x76a   :  { %2791 = vmatpush1.msra.mxu0 %v4632_v58  ;;  %2971 = vmatprep.subr.mxu1 %v4516_v4  ;;  %v2604_v4 = vrot.slane %v2587_v1, %v4342_v19  ;;  %v2600_v39 = vrot.slane %v2587_v1, %v4333_v16  ;;  %v2612_v31 = vrot.slane %v2587_v1, %v4357_v54 }
 0x76b   :  { %2792 = vmatprep.subr.mxu0 %v4638_v59  ;;  %2972 = vmatpush1.msra.mxu1 %v4526_v8 }
 0x76c   :  { %2793 = vmatpush1.msra.mxu0 %v4645_v60  ;;  %2973 = vmatprep.subr.mxu1 %v4538_v53  ;;  %v2557_v53 = vld [vmem:[#allocation2 + $0x30] sm:$0xf] }
 0x76d   :  { %2794 = vmatprep.subr.mxu0 %v4652_v61  ;;  %2974 = vmatpush1.msra.mxu1 %v4550_v11 }
 0x76e   :  { %2795 = vmatpush1.msra.mxu0 %v4659_v63  ;;  %2975 = vmatprep.subr.mxu1 %v4562_v13 }
 0x76f   :  { %3589 = vmatmul.mubr.msk.f32.vlgmr.msra.gmra.mxu0 %vm233_vm5, %v4745_v35  ;;  %3040 = vmatprep.subr.mxu0 %v4509_v3  ;;  %v2592_v3 = vrot.slane %v2587_v1, %v4330_v15 }
 0x770   :  { %3041 = vmatpush1.msra.mxu0 %v4521_v6  ;;  %2976 = vmatpush1.msra.mxu1 %v4579_v24 }
 0x771   :  { %3042 = vmatprep.subr.mxu0 %v4533_v10  ;;  %3009 = vmatprep.mubr.f32.mxu1 %v3931_v7 }
 0x772   :  { %3043 = vmatpush1.msra.mxu0 %v4543_v9  ;;  %3080 = vmatprep.mubr.f32.mxu0 %v3931_v7  ;;  %v2596_v9 = vrot.slane %v2587_v1, %v4339_v18 }
 0x773   :  { %3044 = vmatprep.subr.mxu0 %v4555_v12  ;;  %3111 = vmatprep.subr.mxu1 %v4591_v28  ;;  %v2608_v28 = vrot.slane %v2587_v1, %v4349_v45 }
 0x774   :  { %3045 = vmatpush1.msra.mxu0 %v4567_v23 }
 0x775   :  { %3046 = vmatprep.subr.mxu0 %v4572_v56  ;;  %v2560_v56 = vld [vmem:[#allocation2 + $0xb8] sm:$0xf] }
 0x776   :  { %3047 = vmatpush1.msra.mxu0 %v4584_v25 }
 0x827   :  { %v2688_v6 = vpop.f32.mrf.mxu0  ;;  %v2759_v8 = vpop.f32.mrf.mxu1 }
 0x828   :  { %v2689_v10 = vadd.f32 %v2688_v6, %v2592_v3  ;;  %v2760_v2 = vadd.f32 %v2759_v8, %v2600_v39  ;;  %v3251_v39 = vld [vmem:[%s4954_s8 + $0x10] sm:$0xff] }
 0x829   :  { %v2761_v11 = vpop.f32.mrf.mxu1  ;;  %v2690_v13 = vpop.f32.mrf.mxu0 }
 0x82a   :  { %v2835_v12 = vadd.f32 %v2689_v10, %v2557_v53  ;;  %v2762_v23 = vadd.f32 %v2761_v11, %v2604_v4  ;;  %v2691_v50 = vadd.f32 %v2690_v13, %v2596_v9 }
 0x82c   :  { %v3590_v24 = vmul.f32 -1.442695, %v2835_v12  ;;  %v2852_v25 = vadd.f32 %v2762_v23, %v2560_v56  ;;  %v2842_v33 = vadd.f32 %v2691_v50, %v2558_v26  ;;  %v3242_v56 = vld [vmem:[%s4953_s7 + $0x58] sm:$0xff]  ;;  %v3240_v50 = vld [vmem:[%s4953_s7 + $0x48] sm:$0xff]  ;;  %v3257_v26 = vld [vmem:[%s4954_s8 + $0x40] sm:$0xff] }
 0x82e   :  { %3886 = vpow2.f32 %v3590_v24  ;;  %v3592_v27 = vmul.f32 -1.442695, %v2852_v25  ;;  %v3591_v51 = vmul.f32 -1.442695, %v2842_v33  ;;  %v3260_v24 = vld [vmem:[%s4954_s8 + $0x58] sm:$0xff]  ;;  %v3241_v25 = vld [vmem:[%s4953_s7 + $0x50] sm:$0xff] }
 0x82f   :  { %v2830_v36 = vpop.f32.mrf.mxu0  ;;  %v3256_v33 = vld [vmem:[%s4954_s8 + $0x38] sm:$0xff] }
 0x830   :  { %v2831_v20 = vadd.f32 %v2830_v36, %v2608_v28  ;;  %3888 = vpow2.f32 %v3592_v27  ;;  %v3259_v28 = vld [vmem:[%s4954_s8 + $0x50] sm:$0xff]  ;;  %v3258_v27 = vld [vmem:[%s4954_s8 + $0x48] sm:$0xff]  ;;  %v3239_v36 = vld [vmem:[%s4953_s7 + $0x40] sm:$0xff] }
 0x831   :  { %3890 = vpow2.f32 %v3591_v51  ;;  %v2832_v32 = vpop.f32.mrf.mxu0  ;;  %v3236_v51 = vld [vmem:[%s4953_s7 + $0x28] sm:$0xff] }
 0x832   :  { %v2859_v0 = vadd.f32 %v2831_v20, %v2561_v62  ;;  %v2833_v17 = vadd.f32 %v2832_v32, %v2612_v31  ;;  %v3238_v20 = vld [vmem:[%s4953_s7 + $0x38] sm:$0xff]  ;;  %v3237_v62 = vld [vmem:[%s4953_s7 + $0x30] sm:$0xff]  ;;  %v3231_v31 = vld [vmem:[%s4953_s7] sm:$0xff] }
 0x833   :  { %v2910_v32 = vld [vmem:[%s4952_s5] sm:$0x3f] }
 0x834   :  { %v3593_v21 = vmul.f32 -1.442695, %v2859_v0  ;;  %v3255_v0 = vld [vmem:[%s4954_s8 + $0x30] sm:$0xff] }
 0x836   :  { %3892 = vpow2.f32 %v3593_v21  ;;  %v3254_v21 = vld [vmem:[%s4954_s8 + $0x28] sm:$0xff] }
 0x83b   :  { %v3887_v37 = vpop.eup %3886 }
 0x83c   :  { %v2839_v38 = vadd.f32 1.0, %v3887_v37  ;;  %v3235_v37 = vld [vmem:[%s4953_s7 + $0x20] sm:$0xff] }
 0x83d   :  { %v3889_v29 = vpop.eup %3888 }
 0x83e   :  { %3894 = vrcp.f32 %v2839_v38  ;;  %v2856_v34 = vadd.f32 1.0, %v3889_v29  ;;  %v3891_v49 = vpop.eup %3890  ;;  %v3253_v38 = vld [vmem:[%s4954_s8 + $0x20] sm:$0xff]  ;;  %v3234_v29 = vld [vmem:[%s4953_s7 + $0x18] sm:$0xff] }
 0x83f   :  { %v2846_v57 = vadd.f32 1.0, %v3891_v49  ;;  %v3233_v49 = vld [vmem:[%s4953_s7 + $0x10] sm:$0xff] }
 0x840   :  { %3896 = vrcp.f32 %v2856_v34  ;;  %v3252_v34 = vld [vmem:[%s4954_s8 + $0x18] sm:$0xff] }
 0x841   :  { %3898 = vrcp.f32 %v2846_v57  ;;  %v3250_v57 = vld [vmem:[%s4954_s8 + $0x8] sm:$0xff] }
 0x843   :  { %v3893_v40 = vpop.eup %3892 }
 0x844   :  { %v2863_v43 = vadd.f32 1.0, %v3893_v40  ;;  %v3232_v40 = vld [vmem:[%s4953_s7 + $0x8] sm:$0xff] }
 0x846   :  { %3900 = vrcp.f32 %v2863_v43  ;;  %v2919_v43 = vrot.slane %v2910_v32, %v4339_v18 }
 0x84b   :  { %v3895_v42 = vpop.eup %3894 }
 0x84c   :  { %v2849_v22 = vmul.f32 %v3895_v42, %v2760_v2  ;;  %v3249_v2 = vld [vmem:[%s4954_s8] sm:$0xff]  ;;  %v2915_v42 = vrot.slane %v2910_v32, %v4330_v15 }
 0x84d   :  { %v3897_v46 = vpop.eup %3896 }
 0x84e   :  { %v2850_v48 = vadd.f32 %v2849_v22, %v2559_v44  ;;  %v2866_v52 = vmul.f32 %v3897_v46, %v2833_v17  ;;  %v3899_v41 = vpop.eup %3898  ;;  %v2927_v22 = vrot.slane %v2910_v32, %v4342_v19 }
 0x84f   :  { %v2869_v1 = vsub.f32 1.0, %v3899_v41  ;;  %v2871_v53 = vmul.f32 %v3899_v41, %v4745_v35 }
 0x850   :  { %3902 = vtanh.f32 %v2850_v48  ;;  %v2867_v30 = vadd.f32 %v2866_v52, %v2562_v47 }
 0x852   :  { %3904 = vtanh.f32 %v2867_v30 }
 0x853   :  { %v3901_v3 = vpop.eup %3900 }
 0x854   :  { %v2873_v8 = vsub.f32 1.0, %v3901_v3  ;;  %v2875_v11 = vmul.f32 %v3901_v3, %v4745_v35  ;;  %v3229_v35 = vld [vmem:[#allocation3] sm:$0xff]  ;;  %v2880_v3 = vld [vmem:[#allocation2 + $0x30] sm:$0xf0] }
 0x85d   :  { %v3903_v4 = vpop.eup %3902 }
 0x85e   :  { %v2870_v6 = vmul.f32 %v3903_v4, %v2869_v1 }
 0x85f   :  { %v3905_v10 = vpop.eup %3904 }
 0x860   :  { %v2874_v9 = vmul.f32 %v3905_v10, %v2873_v8  ;;  %v2872_v12 = vadd.f32 %v2871_v53, %v2870_v6  ;;  %v2931_v6 = vrot.slane %v2910_v32, %v4349_v45  ;;  %v2883_v8 = vld [vmem:[#allocation2 + $0xb8] sm:$0xf0] }
 0x862   :  { %v2876_v13 = vadd.f32 %v2875_v11, %v2874_v9  ;;  %v2881_v11 = vld [vmem:[#allocation2 + $0x58] sm:$0xf0] }
 0x864   :  { %v4794_v23 = vsel %vm539_vm6, %v2872_v12, %v2876_v13 }
 0x865   :  { %2878 = vst [vmem:[#allocation3 + $0xc] sm:$0x3] %v4794_v23  ;;  %2879 = vst [vmem:[#allocation4] sm:$0xc] %v4794_v23  ;;  %3594 = vmatmul.mubr.msk.f32.vlgmr.msra.gmra.mxu1 %vm233_vm5, %v4794_v23  ;;  %3595 = vmatmul.mubr.msk.f32.vlgmr.msra.gmra.mxu0 %vm233_vm5, %v4794_v23 }
 0x866   :  { %3112 = vmatpush1.msra.mxu1 %v4612_v55  ;;  %3151 = vmatprep.mubr.f32.mxu1 %v3931_v7  ;;  %v3246_v7 = vld [vmem:[%s4953_s7 + $0x78] sm:$0xff] }
 0x867   :  { %3113 = vmatprep.subr.mxu1 %v4621_v5  ;;  %v3264_v55 = vld [vmem:[%s4954_s8 + $0x78] sm:$0xff]  ;;  %v3245_v5 = vld [vmem:[%s4953_s7 + $0x70] sm:$0xff] }
 0x868   :  { %3114 = vmatpush1.msra.mxu1 %v4632_v58  ;;  %3681 = vmatprep.subr.mxu0 %v3264_v55  ;;  %v3263_v58 = vld [vmem:[%s4954_s8 + $0x70] sm:$0xff] }
 0x869   :  { %3115 = vmatprep.subr.mxu1 %v4638_v59  ;;  %3682 = vmatpush3.msra.mxu0 %v3264_v55  ;;  %v3244_v59 = vld [vmem:[%s4953_s7 + $0x68] sm:$0xff] }
 0x86a   :  { %3116 = vmatpush1.msra.mxu1 %v4645_v60  ;;  %3683 = vmatprep.subr.mxu0 %v3263_v58  ;;  %v3262_v60 = vld [vmem:[%s4954_s8 + $0x68] sm:$0xff] }
 0x86b   :  { %3117 = vmatprep.subr.mxu1 %v4652_v61  ;;  %3684 = vmatpush3.msra.mxu0 %v3263_v58  ;;  %v3243_v61 = vld [vmem:[%s4953_s7 + $0x60] sm:$0xff] }
 0x86c   :  { %3118 = vmatpush1.msra.mxu1 %v4659_v63  ;;  %3685 = vmatprep.subr.mxu0 %v3262_v60  ;;  %v3261_v63 = vld [vmem:[%s4954_s8 + $0x60] sm:$0xff] }
 0x86d   :  { %3596 = vmatmul.mubr.msk.f32.vlgmr.msra.gmra.mxu1 %vm233_vm5, %v4794_v23  ;;  %3716 = vmatprep.subr.mxu1 %v3246_v7 }
 0x86e   :  { %3748 = vmatprep.mubr.f32.mxu1 %v3229_v35  ;;  %3717 = vmatpush3.msra.mxu1 %v3246_v7  ;;  %v2884_v35 = vld [vmem:[#allocation2 + $0x20] sm:$0xf0] }
 0x86f   :  { %3718 = vmatprep.subr.mxu1 %v3245_v5  ;;  %3686 = vmatpush3.msra.mxu0 %v3262_v60 }
 0x870   :  { %3719 = vmatpush3.msra.mxu1 %v3245_v5  ;;  %3687 = vmatprep.subr.mxu0 %v3261_v63 }
 0x871   :  { %3720 = vmatprep.subr.mxu1 %v3244_v59  ;;  %3688 = vmatpush3.msra.mxu0 %v3261_v63 }
 0x872   :  { %3721 = vmatpush3.msra.mxu1 %v3244_v59  ;;  %3689 = vmatprep.subr.mxu0 %v3260_v24 }
 0x873   :  { %3722 = vmatprep.subr.mxu1 %v3243_v61  ;;  %3690 = vmatpush3.msra.mxu0 %v3260_v24 }
 0x874   :  { %3723 = vmatpush3.msra.mxu1 %v3243_v61  ;;  %3691 = vmatprep.subr.mxu0 %v3259_v28  ;;  %v2923_v61 = vrot.slane %v2910_v32, %v4333_v16  ;;  %v2885_v16 = vld [vmem:[#allocation2 + $0x8] sm:$0xf0] }
 0x875   :  { %3724 = vmatprep.subr.mxu1 %v3242_v56  ;;  %3692 = vmatpush3.msra.mxu0 %v3259_v28 }
 0x876   :  { %3725 = vmatpush3.msra.mxu1 %v3242_v56  ;;  %3693 = vmatprep.subr.mxu0 %v3258_v27  ;;  %v2935_v56 = vrot.slane %v2910_v32, %v4357_v54 }
 0x877   :  { %3726 = vmatprep.subr.mxu1 %v3241_v25  ;;  %3694 = vmatpush3.msra.mxu0 %v3258_v27 }
 0x878   :  { %3727 = vmatpush3.msra.mxu1 %v3241_v25  ;;  %3695 = vmatprep.subr.mxu0 %v3257_v26 }
 0x879   :  { %3728 = vmatprep.subr.mxu1 %v3240_v50  ;;  %3696 = vmatpush3.msra.mxu0 %v3257_v26 }
 0x87a   :  { %3729 = vmatpush3.msra.mxu1 %v3240_v50  ;;  %3697 = vmatprep.subr.mxu0 %v3256_v33 }
 0x87b   :  { %3730 = vmatprep.subr.mxu1 %v3239_v36  ;;  %3698 = vmatpush3.msra.mxu0 %v3256_v33 }
 0x87c   :  { %3731 = vmatpush3.msra.mxu1 %v3239_v36  ;;  %3699 = vmatprep.subr.mxu0 %v3255_v0 }
 0x87d   :  { %3732 = vmatprep.subr.mxu1 %v3238_v20  ;;  %3700 = vmatpush3.msra.mxu0 %v3255_v0 }
 0x87e   :  { %3733 = vmatpush3.msra.mxu1 %v3238_v20  ;;  %3701 = vmatprep.subr.mxu0 %v3254_v21 }
 0x87f   :  { %3734 = vmatprep.subr.mxu1 %v3237_v62  ;;  %3702 = vmatpush3.msra.mxu0 %v3254_v21 }
 0x880   :  { %3735 = vmatpush3.msra.mxu1 %v3237_v62  ;;  %3703 = vmatprep.subr.mxu0 %v3253_v38  ;;  %v2882_v62 = vld [vmem:[#allocation2 + $0x80] sm:$0xf0] }
 0x881   :  { %3736 = vmatprep.subr.mxu1 %v3236_v51  ;;  %3704 = vmatpush3.msra.mxu0 %v3253_v38 }
 0x882   :  { %3737 = vmatpush3.msra.mxu1 %v3236_v51  ;;  %3705 = vmatprep.subr.mxu0 %v3252_v34 }
 0x883   :  { %3738 = vmatprep.subr.mxu1 %v3235_v37  ;;  %3706 = vmatpush3.msra.mxu0 %v3252_v34 }
 0x884   :  { %3739 = vmatpush3.msra.mxu1 %v3235_v37  ;;  %3707 = vmatprep.subr.mxu0 %v3251_v39 }
 0x885   :  { %3740 = vmatprep.subr.mxu1 %v3234_v29  ;;  %3708 = vmatpush3.msra.mxu0 %v3251_v39  ;;  %v3212_v39 = vrot.slane %v4794_v23, 4  ;;  %v3248_v23 = vld [vmem:[#allocation4 + $0x8] sm:$0xff] }
 0x886   :  { %3741 = vmatpush3.msra.mxu1 %v3234_v29  ;;  %3709 = vmatprep.subr.mxu0 %v3250_v57 }
 0x887   :  { %3742 = vmatprep.subr.mxu1 %v3233_v49  ;;  %3710 = vmatpush3.msra.mxu0 %v3250_v57 }
 0x888   :  { %3743 = vmatpush3.msra.mxu1 %v3233_v49  ;;  %3711 = vmatprep.subr.mxu0 %v3249_v2 }
 0x889   :  { %3744 = vmatprep.subr.mxu1 %v3232_v40  ;;  %3712 = vmatpush3.msra.mxu0 %v3249_v2 }
 0x88a   :  { %3745 = vmatpush3.msra.mxu1 %v3232_v40 }
 0x88b   :  { %3746 = vmatprep.subr.mxu1 %v3231_v31 }
 0x88c   :  { %3747 = vmatpush3.msra.mxu1 %v3231_v31 }
 0x925   :  { %v3011_v44 = vpop.f32.mrf.mxu1  ;;  %v3082_v17 = vpop.f32.mrf.mxu0 }
 0x926   :  { %v3012_v46 = vadd.f32 %v3011_v44, %v2915_v42  ;;  %v3083_v24 = vadd.f32 %v3082_v17, %v2923_v61 }
 0x927   :  { %v3013_v48 = vpop.f32.mrf.mxu1  ;;  %v3084_v52 = vpop.f32.mrf.mxu0 }
 0x928   :  { %v3159_v47 = vrot.slane %v3012_v46, 4  ;;  %v3014_v30 = vadd.f32 %v3013_v48, %v2919_v43  ;;  %v3085_v41 = vadd.f32 %v3084_v52, %v2927_v22  ;;  %v3179_v36 = vrot.slane %v3083_v24, 4 }
 0x92a   :  { %v3161_v4 = vadd.f32 %v3159_v47, %v2880_v3  ;;  %v3185_v1 = vrot.slane %v3085_v41, 4  ;;  %v3169_v15 = vrot.slane %v3014_v30, 4  ;;  %v3429_v47 = vld [vmem:[%s4955_s10 + $0x18] sm:$0xff]  ;;  %v3428_v30 = vld [vmem:[%s4955_s10 + $0x10] sm:$0xff]  ;;  %v3426_v41 = vld [vmem:[%s4955_s10] sm:$0xff] }
 0x92b   :  { %3751 = vmatprep.subr.mxu0 %v3429_v47 }
 0x92c   :  { %v3597_v10 = vmul.f32 -1.442695, %v3161_v4  ;;  %v3187_v53 = vadd.f32 %v3185_v1, %v2883_v8  ;;  %v3171_v12 = vadd.f32 %v3169_v15, %v2881_v11  ;;  %v3602_v11 = vld [vmem:[%s4957_s11] ss:$0 sm:$0xff] }
 0x92d   :  { %v3153_v18 = vpop.f32.mrf.mxu1 }
 0x92e   :  { %3906 = vpow2.f32 %v3597_v10  ;;  %v3599_v19 = vmul.f32 -1.442695, %v3187_v53  ;;  %v3154_v9 = vadd.f32 %v3153_v18, %v2931_v6  ;;  %v3598_v55 = vmul.f32 -1.442695, %v3171_v12  ;;  %v3601_v6 = vld [vmem:[%s4956_s9] ss:$0 sm:$0xff] }
 0x92f   :  { %v3155_v25 = vpop.f32.mrf.mxu1 }
 0x930   :  { %v3195_v13 = vrot.slane %v3154_v9, 4  ;;  %3908 = vpow2.f32 %v3599_v19  ;;  %v3156_v27 = vadd.f32 %v3155_v25, %v2935_v56 }
 0x931   :  { %3910 = vpow2.f32 %v3598_v55 }
 0x932   :  { %v3197_v7 = vadd.f32 %v3195_v13, %v2884_v35  ;;  %v3205_v0 = vrot.slane %v3156_v27, 4 }
 0x934   :  { %v3600_v5 = vmul.f32 -1.442695, %v3197_v7 }
 0x936   :  { %3912 = vpow2.f32 %v3600_v5 }
 0x93b   :  { %v3907_v58 = vpop.eup %3906 }
 0x93c   :  { %v3165_v45 = vadd.f32 1.0, %v3907_v58 }
 0x93d   :  { %v3909_v59 = vpop.eup %3908 }
 0x93e   :  { %3914 = vrcp.f32 %v3165_v45  ;;  %v3191_v60 = vadd.f32 1.0, %v3909_v59  ;;  %v3911_v63 = vpop.eup %3910 }
 0x93f   :  { %v3175_v50 = vadd.f32 1.0, %v3911_v63 }
 0x940   :  { %3916 = vrcp.f32 %v3191_v60 }
 0x941   :  { %3918 = vrcp.f32 %v3175_v50 }
 0x943   :  { %v3913_v28 = vpop.eup %3912 }
 0x944   :  { %v3201_v20 = vadd.f32 1.0, %v3913_v28 }
 0x946   :  { %3920 = vrcp.f32 %v3201_v20 }
 0x94b   :  { %v3915_v26 = vpop.eup %3914 }
 0x94c   :  { %v3181_v33 = vmul.f32 %v3915_v26, %v3179_v36 }
 0x94d   :  { %v3917_v51 = vpop.eup %3916 }
 0x94e   :  { %v3182_v21 = vadd.f32 %v3181_v33, %v2882_v62  ;;  %v3207_v37 = vmul.f32 %v3917_v51, %v3205_v0  ;;  %v3919_v54 = vpop.eup %3918 }
 0x94f   :  { %v3210_v34 = vsub.f32 1.0, %v3919_v54  ;;  %v3214_v57 = vmul.f32 %v3919_v54, %v3212_v39 }
 0x950   :  { %3922 = vtanh.f32 %v3182_v21  ;;  %v3208_v38 = vadd.f32 %v3207_v37, %v2885_v16 }
 0x952   :  { %3924 = vtanh.f32 %v3208_v38 }
 0x953   :  { %v3921_v29 = vpop.eup %3920 }
 0x954   :  { %v3216_v31 = vsub.f32 1.0, %v3921_v29  ;;  %v3218_v42 = vmul.f32 %v3921_v29, %v3212_v39 }
 0x95d   :  { %v3923_v49 = vpop.eup %3922 }
 0x95e   :  { %v3211_v40 = vmul.f32 %v3923_v49, %v3210_v34 }
 0x95f   :  { %v3925_v2 = vpop.eup %3924 }
 0x960   :  { %v3215_v32 = vadd.f32 %v3214_v57, %v3211_v40  ;;  %v3217_v43 = vmul.f32 %v3925_v2, %v3216_v31 }
 0x962   :  { %v3219_v22 = vadd.f32 %v3218_v42, %v3217_v43  ;;  %v3221_v44 = vrot.slane %v3215_v32, 4 }
 0x964   :  { %v3224_v17 = vrot.slane %v3219_v22, 4 }
 0x966   :  { %v3226_v46 = vsel %vm539_vm6, %v3221_v44, %v3224_v17 }
 0x967   :  { %3227 = vst [vmem:[#allocation3 + $0xe] sm:$0x3] %v3226_v46  ;;  %3228 = vst [vmem:[#allocation4 - $0x2] sm:$0xc] %v3226_v46 }
 0x96e   :  { %v3247_v48 = vld [vmem:[#allocation4] sm:$0xff]  ;;  %v3230_v52 = vld [vmem:[#allocation3 + $0x8] sm:$0xff] }
 0x96f   :  { %3713 = vmatprep.mubr.f32.mxu0 %v3247_v48  ;;  %3749 = vmatmul.mubr.f32.vlgmr.msra.gmra.mxu1 %v3230_v52 }
 0x970   :  { %3714 = vmatmul.mubr.f32.vlgmr.msra.gmra.mxu0 %v3248_v23 }
 0x971   :  { %3752 = vmatpush3.msra.mxu0 %v3429_v47 }
 0x972   :  { %3753 = vmatprep.subr.mxu0 %v3428_v30 }
 0x973   :  { %3754 = vmatpush3.msra.mxu0 %v3428_v30 }
 0x974   :  { %3755 = vmatprep.subr.mxu0 %v3427_v14 }
 0x975   :  { %3756 = vmatpush3.msra.mxu0 %v3427_v14 }
 0x976   :  { %3757 = vmatprep.subr.mxu0 %v3426_v41 }
 0x977   :  { %3758 = vmatpush3.msra.mxu0 %v3426_v41 }
 0xa2f   :  { %v3750_v3 = vpop.f32.mrf.mxu1 }
 0xa30   :  { %v3715_v4 = vpop.f32.mrf.mxu0 }
 0xa31   :  { %v3412_v1 = vadd.f32 %v3750_v3, %v3715_v4  ;;  %v3406_v8 = vpop.f32.mrf.mxu1 }
 0xa32   :  { %v3331_v10 = vpop.f32.mrf.mxu0 }
 0xa33   :  { %v3407_v15 = vadd.f32 %v3406_v8, %v3331_v10  ;;  %v3423_v53 = vadd.f32 %v3601_v6, %v3412_v1 }
 0xa35   :  { %v3422_v18 = vadd.f32 %v3601_v6, %v3407_v15 }
 0xa37   :  { %3926 = vtanh.f32 %v3422_v18 }
 0xa38   :  { %3928 = vtanh.f32 %v3423_v53 }
 0xa44   :  { %v3927_v19 = vpop.eup %3926 }
 0xa45   :  { %v3929_v9 = vpop.eup %3928  ;;  %3759 = vmatprep.mubr.msk.f32.mxu0 %vm233_vm5, %v3927_v19 }
 0xa46   :  { %3760 = vmatmul.mubr.msk.f32.vlgmr.msra.gmra.mxu0 %vm233_vm5, %v3929_v9 }
 0xb06   :  { %v3761_v12 = vpop.f32.mrf.mxu0 }
 0xb07   :  { %v3515_v13 = vadd.f32 %v3761_v12, %v3602_v11 }
 0xb08   :  { %v3509_v35 = vpop.f32.mrf.mxu0 }
 0xb09   :  { %3520 = vst.msk [vmem:[%s4958_s12 + $0x8] sm:$0xff] %vm3518_vm7, %v3515_v13  ;;  %v3510_v7 = vadd.f32 %v3602_v11, %v3509_v35 }
 0xb0b   :  { %3519 = vst.msk [vmem:[%s4958_s12] sm:$0xff] %vm3518_vm7, %v3510_v7 }

</bundles_post_ra>
